<compile_context>
chip_gen: v5e
topology: v5e:2x2
jax: 0.10.0
libtpu: 0.0.40
codegen_flags: <defaults>
</compile_context>

<pallas_src>
import functools

import jax
import jax.numpy as jnp
from jax import lax
from jax.experimental import pallas as pl
from jax.experimental.pallas import tpu as pltpu


def _vmem_budget_bytes():
    """~75% of physical VMEM; conservative fallback that is safe on v7x."""
    try:
        cap = int(pltpu.get_tpu_info().vmem_capacity_bytes)
    except Exception:
        cap = 64 * 1024 * 1024
    return int(cap * 3 // 4)


def _sigmoid_via_tanh(x):
    # sigmoid(x) == 0.5 * (tanh(x/2) + 1): halves EUP work vs exp + divide.
    return 0.5 * (jnp.tanh(0.5 * x) + 1.0)


def _pick_seq_block(seq, batch, hidden, budget_bytes, cap=64):
    """Largest seq block that fits the VMEM budget (weights resident, x/y
    double-buffered bf16, gin scratch f32), capped for sane unrolling."""
    four_h = 4 * hidden
    fixed = 2 * (hidden * four_h * 2)            # resident W_ih^T + W_hh^T (bf16)
    fixed += 4 * batch * hidden * 4              # h0/c0 blocks + h/c scratch (f32)
    fixed += four_h * 4                          # fused bias (f32)
    per_ts = batch * hidden * (2 * 2 +           # x block, bf16, double-buffered
                               2 * 2 +           # y block, bf16, double-buffered
                               4 * 4)            # gin scratch, f32, 4H wide
    ts = (budget_bytes - fixed) // max(per_ts, 1)
    return int(max(1, min(seq, cap, ts)))


# ----------------------------------------------------------------------------
# Fused kernel: per seq block, one input-projection GEMM (off the serial path)
# followed by the per-timestep recurrence (only h @ W_hh stays serial).
# ----------------------------------------------------------------------------
def _lstm_fused_kernel(x_ref, w_ih_ref, w_hh_ref, b_ref, h0_ref, c0_ref,
                       y_ref, hn_ref, cn_ref,
                       gin_sc, h_sc, c_sc,
                       *, seq_len, ts, masked):
    s_blk = pl.program_id(0)
    bt = h_sc.shape[0]
    H = h_sc.shape[-1]

    @pl.when(s_blk == 0)
    def _():
        h_sc[...] = h0_ref[...]
        c_sc[...] = c0_ref[...]

    # Block input projection for all ts timesteps at once:
    # (ts*bt, H) bf16 @ (H, 4H) bf16 -> f32, + fused bias.  Not on the serial
    # per-timestep dependence chain.
    x_flat = x_ref[...].reshape(ts * bt, H)
    gin_sc[...] = (jnp.dot(x_flat, w_ih_ref[...],
                           preferred_element_type=jnp.float32)
                   + b_ref[...]).reshape(ts, bt, 4 * H)

    def step(t, carry):
        h, c = carry
        # bf16 MXU operands, f32 accumulation; input projection precomputed.
        gates = gin_sc[t] + jnp.dot(h.astype(jnp.bfloat16), w_hh_ref[...],
                                    preferred_element_type=jnp.float32)
        i_g = _sigmoid_via_tanh(gates[:, 0 * H:1 * H])
        f_g = _sigmoid_via_tanh(gates[:, 1 * H:2 * H])
        g_g = jnp.tanh(gates[:, 2 * H:3 * H])
        o_g = _sigmoid_via_tanh(gates[:, 3 * H:4 * H])
        c_new = f_g * c + i_g * g_g
        h_new = o_g * jnp.tanh(c_new)
        if masked:
            # Padded timesteps (beyond the true sequence length) freeze state.
            valid = (s_blk * ts + t) < seq_len
            h_new = jnp.where(valid, h_new, h)
            c_new = jnp.where(valid, c_new, c)
        y_ref[t] = h_new.astype(y_ref.dtype)
        return h_new, c_new

    h, c = lax.fori_loop(0, ts, step, (h_sc[...], c_sc[...]),
                         unroll=min(ts, 8))
    h_sc[...] = h
    c_sc[...] = c

    @pl.when(s_blk == pl.num_programs(0) - 1)
    def _():
        hn_ref[...] = h_sc[...].astype(hn_ref.dtype)
        cn_ref[...] = c_sc[...].astype(cn_ref.dtype)


def encoder_lstm_pallas(x_tm, w_ih_t, w_hh_t, bias, h0, c0):
    """x_tm: (S, B, H) bf16 time-major embeddings; w_ih_t/w_hh_t: (H, 4H) bf16;
    bias: (1, 4H) f32 (b_ih + b_hh); h0/c0: (B, H) f32.
    Returns y (S, B, H) bf16, h_n (B, H) f32, c_n (B, H) f32."""
    S, B, H = x_tm.shape
    four_h = 4 * H
    budget = _vmem_budget_bytes()
    ts = _pick_seq_block(S, B, H, budget)
    ns = pl.cdiv(S, ts)
    s_pad = ns * ts
    if s_pad != S:
        x_tm = jnp.pad(x_tm, ((0, s_pad - S), (0, 0), (0, 0)))

    kernel = functools.partial(_lstm_fused_kernel,
                               seq_len=S, ts=ts, masked=(s_pad != S))

    grid_spec = pltpu.PrefetchScalarGridSpec(
        num_scalar_prefetch=0,
        grid=(ns,),
        in_specs=[
            pl.BlockSpec((ts, B, H), lambda s: (s, 0, 0)),            # x (bf16)
            pl.BlockSpec((H, four_h), lambda s: (0, 0),
                         pipeline_mode=pl.Buffered(1)),               # W_ih^T
            pl.BlockSpec((H, four_h), lambda s: (0, 0),
                         pipeline_mode=pl.Buffered(1)),               # W_hh^T
            pl.BlockSpec((1, four_h), lambda s: (0, 0),
                         pipeline_mode=pl.Buffered(1)),               # bias
            pl.BlockSpec((B, H), lambda s: (0, 0),
                         pipeline_mode=pl.Buffered(1)),               # h0
            pl.BlockSpec((B, H), lambda s: (0, 0),
                         pipeline_mode=pl.Buffered(1)),               # c0
        ],
        out_specs=[
            pl.BlockSpec((ts, B, H), lambda s: (s, 0, 0)),            # y
            pl.BlockSpec((B, H), lambda s: (0, 0)),                   # h_n
            pl.BlockSpec((B, H), lambda s: (0, 0)),                   # c_n
        ],
        scratch_shapes=[
            pltpu.VMEM((ts, B, four_h), jnp.float32),                 # gin block
            pltpu.VMEM((B, H), jnp.float32),                          # h state
            pltpu.VMEM((B, H), jnp.float32),                          # c state
        ],
    )
    # TODO(synk): h0->h_n / c0->c_n input_output_aliases would save two small
    # VMEM blocks but would donate the caller's hidden-state buffers; skipped.
    y, h_n, c_n = pl.pallas_call(
        kernel,
        out_shape=(
            jax.ShapeDtypeStruct((s_pad, B, H), jnp.bfloat16),
            jax.ShapeDtypeStruct((B, H), jnp.float32),
            jax.ShapeDtypeStruct((B, H), jnp.float32),
        ),
        grid_spec=grid_spec,
        compiler_params=pltpu.CompilerParams(
            dimension_semantics=("arbitrary",),
            vmem_limit_bytes=budget),
    )(x_tm, w_ih_t, w_hh_t, bias, h0, c0)
    if s_pad != S:
        y = y[:S]
    return y, h_n, c_n


# ----------------------------------------------------------------------------
# EncoderLSTM module (parameters + forward glue)
# ----------------------------------------------------------------------------
class EncoderLSTMPallas:
    def __init__(self, input_size, hidden_size, n_layers=1, key=None):
        assert n_layers == 1, "synthetic kernel implements n_layers=1"
        self.hidden_size = hidden_size
        self.n_layers = n_layers
        if key is None:
            key = jax.random.PRNGKey(0)
        ks = jax.random.split(key, 9)
        scale = 1.0 / jnp.sqrt(hidden_size)

        # Embedding: (input_size, hidden); bf16 copy so forward() gathers the
        # MXU dtype directly (no per-call cast pass).
        self.embedding = jax.random.normal(
            ks[0], (input_size, hidden_size), jnp.float32)
        self.embedding_bf16 = self.embedding.astype(jnp.bfloat16)

        def lstm_params(k0, k1, k2, k3):
            w_ih = jax.random.uniform(k0, (4 * hidden_size, hidden_size),
                                      jnp.float32, -scale, scale)
            w_hh = jax.random.uniform(k1, (4 * hidden_size, hidden_size),
                                      jnp.float32, -scale, scale)
            b_ih = jax.random.uniform(k2, (4 * hidden_size,),
                                      jnp.float32, -scale, scale)
            b_hh = jax.random.uniform(k3, (4 * hidden_size,),
                                      jnp.float32, -scale, scale)
            return dict(
                # pre-transposed, bf16 MXU operands (cast once at init)
                w_ih_t=w_ih.T.astype(jnp.bfloat16),
                w_hh_t=w_hh.T.astype(jnp.bfloat16),
                bias=(b_ih + b_hh).reshape(1, 4 * hidden_size),       # fused, f32
            )

        self.lstm_del = lstm_params(ks[1], ks[2], ks[3], ks[4])
        self.lstm_add = lstm_params(ks[5], ks[6], ks[7], ks[8])

    def init_hidden(self, batch_size=1):
        z = jnp.zeros((self.n_layers, batch_size, self.hidden_size),
                      jnp.float32)
        return (z, z)

    def forward(self, inputs, hidden, is_del: bool):
        # inputs: (batch, seq) int32 token ids; hidden: (n_layers, B, H) pair
        p = self.lstm_del if is_del else self.lstm_add

        # Transpose the tiny index array (not the activations) so the gather
        # produces time-major bf16 embeddings directly.
        emb_tm = jnp.take(self.embedding_bf16, inputs.T, axis=0)   # (S, B, H)

        h0 = hidden[0][0]
        c0 = hidden[1][0]
        y_tm, h_n, c_n = encoder_lstm_pallas(
            emb_tm, p["w_ih_t"], p["w_hh_t"], p["bias"], h0, c0)

        # One layout pass for PyTorch's batch_first output; upcast fuses here.
        output = jnp.transpose(y_tm, (1, 0, 2)).astype(jnp.float32)  # (B, S, H)
        return output, (h_n[None], c_n[None])


# ----------------------------------------------------------------------------
# Pure-JAX f32 reference (for sanity checking the kernel)
# ----------------------------------------------------------------------------
def lstm_reference(x_tm, w_ih_t, w_hh_t, b, h0, c0):
    H = h0.shape[-1]

    def step(carry, x_t):
        h, c = carry
        gates = x_t @ w_ih_t + h @ w_hh_t + b
        i = jax.nn.sigmoid(gates[:, 0 * H:1 * H])
        f = jax.nn.sigmoid(gates[:, 1 * H:2 * H])
        g = jnp.tanh(gates[:, 2 * H:3 * H])
        o = jax.nn.sigmoid(gates[:, 3 * H:4 * H])
        c_new = f * c + i * g
        h_new = o * jnp.tanh(c_new)
        return (h_new, c_new), h_new

    (h_n, c_n), y = jax.lax.scan(step, (h0, c0), x_tm)
    return y, h_n, c_n


if __name__ == "__main__":
    batch, seq, hidden, vocab = 2, 8, 32, 16

    key = jax.random.PRNGKey(0)
    k_tok, k_mod = jax.random.split(key)

    model = EncoderLSTMPallas(vocab, hidden, n_layers=1, key=k_mod)
    inputs = jax.random.randint(k_tok, (batch, seq), 0, vocab, jnp.int32)
    hidden_state = model.init_hidden(batch_size=batch)

    out, (h_n, c_n) = model.forward(inputs, hidden_state, is_del=True)
    out = jax.block_until_ready(out)
    h_n = jax.block_until_ready(h_n)
    c_n = jax.block_until_ready(c_n)

    # Sanity check vs pure-JAX f32 reference using the same (bf16-rounded)
    # parameters, so the comparison isolates the kernel's numerics.
    p = model.lstm_del
    emb_tm = jnp.take(model.embedding_bf16, inputs.T,
                      axis=0).astype(jnp.float32)                 # (S, B, H)
    y_ref, h_ref, c_ref = lstm_reference(
        emb_tm,
        p["w_ih_t"].astype(jnp.float32), p["w_hh_t"].astype(jnp.float32),
        p["bias"], hidden_state[0][0], hidden_state[1][0])
    y_ref_bf = jnp.transpose(y_ref, (1, 0, 2))

    assert out.shape == (batch, seq, hidden)
    assert h_n.shape == (1, batch, hidden) and c_n.shape == (1, batch, hidden)
    assert jnp.allclose(out, y_ref_bf, atol=5e-2), float(
        jnp.max(jnp.abs(out - y_ref_bf)))
    assert jnp.allclose(h_n[0], h_ref, atol=5e-2)
    assert jnp.allclose(c_n[0], c_ref, atol=5e-2)

    # Also exercise the "add" branch.
    out2, _ = model.forward(inputs, hidden_state, is_del=False)
    jax.block_until_ready(out2)

    print("KERNEL_OK")
</pallas_src>

<mosaic_0001>
module attributes {stable_mosaic.version = 11 : i64} {
  func.func @_lstm_fused_kernel(%arg0: i32, %arg1: memref<8x2x32xbf16, #tpu.memory_space<vmem>>, %arg2: memref<32x128xbf16, #tpu.memory_space<vmem>>, %arg3: memref<32x128xbf16, #tpu.memory_space<vmem>>, %arg4: memref<1x128xf32, #tpu.memory_space<vmem>>, %arg5: memref<2x32xf32, #tpu.memory_space<vmem>>, %arg6: memref<2x32xf32, #tpu.memory_space<vmem>>, %arg7: memref<8x2x32xbf16, #tpu.memory_space<vmem>>, %arg8: memref<2x32xf32, #tpu.memory_space<vmem>>, %arg9: memref<2x32xf32, #tpu.memory_space<vmem>>, %arg10: memref<8x2x128xf32, #tpu.memory_space<vmem>>, %arg11: memref<2x32xf32, #tpu.memory_space<vmem>>, %arg12: memref<2x32xf32, #tpu.memory_space<vmem>>) attributes {dimension_semantics = [#tpu.dimension_semantics<arbitrary>], iteration_bounds = array<i64: 1>, scalar_prefetch = 0 : i64, scratch_operands = 3 : i64, tpu.core_type = #tpu.core_type<tc>, window_params = [{transform_indices = @transform_0, window_bounds = array<i64: 8, 2, 32>}, {pipeline_mode = #tpu.pipeline_mode<synchronous>, transform_indices = @transform_1, window_bounds = array<i64: 32, 128>}, {pipeline_mode = #tpu.pipeline_mode<synchronous>, transform_indices = @transform_2, window_bounds = array<i64: 32, 128>}, {pipeline_mode = #tpu.pipeline_mode<synchronous>, transform_indices = @transform_3, window_bounds = array<i64: 1, 128>}, {pipeline_mode = #tpu.pipeline_mode<synchronous>, transform_indices = @transform_4, window_bounds = array<i64: 2, 32>}, {pipeline_mode = #tpu.pipeline_mode<synchronous>, transform_indices = @transform_5, window_bounds = array<i64: 2, 32>}, {transform_indices = @transform_6, window_bounds = array<i64: 8, 2, 32>}, {pipeline_mode = #tpu.pipeline_mode<synchronous>, transform_indices = @transform_7, window_bounds = array<i64: 2, 32>}, {pipeline_mode = #tpu.pipeline_mode<synchronous>, transform_indices = @transform_8, window_bounds = array<i64: 2, 32>}]} {
    %c0_i32 = arith.constant 0 : i32
    %0 = arith.cmpi eq, %arg0, %c0_i32 : i32
    %1 = arith.extui %0 : i1 to i32
    %c0_i32_0 = arith.constant 0 : i32
    %2 = arith.cmpi ne, %1, %c0_i32_0 : i32
    scf.if %2 {
      %c0_149 = arith.constant 0 : index
      %c0_150 = arith.constant 0 : index
      %363 = vector.load %arg5[%c0_149, %c0_150] : memref<2x32xf32, #tpu.memory_space<vmem>>, vector<2x32xf32>
      %c0_151 = arith.constant 0 : index
      %c0_152 = arith.constant 0 : index
      %364 = vector.load %arg11[%c0_151, %c0_152] : memref<2x32xf32, #tpu.memory_space<vmem>>, vector<2x32xf32>
      tpu.vector_store %arg11[%c0_151, %c0_152], %363 {strides = array<i32>} : memref<2x32xf32, #tpu.memory_space<vmem>>, vector<2x32xf32>,
      %c0_153 = arith.constant 0 : index
      %c0_154 = arith.constant 0 : index
      %365 = vector.load %arg6[%c0_153, %c0_154] : memref<2x32xf32, #tpu.memory_space<vmem>>, vector<2x32xf32>
      %c0_155 = arith.constant 0 : index
      %c0_156 = arith.constant 0 : index
      %366 = vector.load %arg12[%c0_155, %c0_156] : memref<2x32xf32, #tpu.memory_space<vmem>>, vector<2x32xf32>
      tpu.vector_store %arg12[%c0_155, %c0_156], %365 {strides = array<i32>} : memref<2x32xf32, #tpu.memory_space<vmem>>, vector<2x32xf32>,
    } else {
    }
    %c0 = arith.constant 0 : index
    %c0_1 = arith.constant 0 : index
    %c0_2 = arith.constant 0 : index
    %3 = vector.load %arg1[%c0, %c0_1, %c0_2] : memref<8x2x32xbf16, #tpu.memory_space<vmem>>, vector<8x2x32xbf16>
    %4 = vector.shape_cast %3 : vector<8x2x32xbf16> to vector<16x32xbf16>
    %c0_3 = arith.constant 0 : index
    %c0_4 = arith.constant 0 : index
    %5 = vector.load %arg2[%c0_3, %c0_4] : memref<32x128xbf16, #tpu.memory_space<vmem>>, vector<32x128xbf16>
    %cst = arith.constant dense<0.000000e+00> : vector<16x128xf32>
    %6 = tpu.matmul %4, %5, %cst {dimension_numbers = #tpu.dot_dimension_numbers<[1], [0], [0], [1], [0, 0, 1, 1], [], []>} : vector<16x32xbf16>, vector<32x128xbf16>, vector<16x128xf32> -> vector<16x128xf32>
    %c0_5 = arith.constant 0 : index
    %c0_6 = arith.constant 0 : index
    %7 = vector.load %arg4[%c0_5, %c0_6] : memref<1x128xf32, #tpu.memory_space<vmem>>, vector<1x128xf32>
    %8 = vector.broadcast %7 : vector<1x128xf32> to vector<16x128xf32>
    %9 = arith.addf %6, %8 : vector<16x128xf32>
    %10 = vector.shape_cast %9 : vector<16x128xf32> to vector<8x2x128xf32>
    %c0_7 = arith.constant 0 : index
    %c0_8 = arith.constant 0 : index
    %c0_9 = arith.constant 0 : index
    %11 = vector.load %arg10[%c0_7, %c0_8, %c0_9] : memref<8x2x128xf32, #tpu.memory_space<vmem>>, vector<8x2x128xf32>
    tpu.vector_store %arg10[%c0_7, %c0_8, %c0_9], %10 {strides = array<i32>} : memref<8x2x128xf32, #tpu.memory_space<vmem>>, vector<8x2x128xf32>,
    %c0_10 = arith.constant 0 : index
    %c0_11 = arith.constant 0 : index
    %12 = vector.load %arg11[%c0_10, %c0_11] : memref<2x32xf32, #tpu.memory_space<vmem>>, vector<2x32xf32>
    %c0_12 = arith.constant 0 : index
    %c0_13 = arith.constant 0 : index
    %13 = vector.load %arg12[%c0_12, %c0_13] : memref<2x32xf32, #tpu.memory_space<vmem>>, vector<2x32xf32>
    %c0_i32_14 = arith.constant 0 : i32
    %14 = arith.index_cast %c0_i32_14 : i32 to index
    %c0_15 = arith.constant 0 : index
    %c0_16 = arith.constant 0 : index
    %15 = vector.load %arg10[%14, %c0_15, %c0_16] : memref<8x2x128xf32, #tpu.memory_space<vmem>>, vector<1x2x128xf32>
    %16 = vector.shape_cast %15 : vector<1x2x128xf32> to vector<2x128xf32>
    %17 = arith.truncf %12 : vector<2x32xf32> to vector<2x32xbf16>
    %c0_17 = arith.constant 0 : index
    %c0_18 = arith.constant 0 : index
    %18 = vector.load %arg3[%c0_17, %c0_18] : memref<32x128xbf16, #tpu.memory_space<vmem>>, vector<32x128xbf16>
    %cst_19 = arith.constant dense<0.000000e+00> : vector<2x128xf32>
    %19 = tpu.matmul %17, %18, %cst_19 {dimension_numbers = #tpu.dot_dimension_numbers<[1], [0], [0], [1], [0, 0, 1, 1], [], []>} : vector<2x32xbf16>, vector<32x128xbf16>, vector<2x128xf32> -> vector<2x128xf32>
    %20 = arith.addf %16, %19 : vector<2x128xf32>
    %21 = vector.extract_strided_slice %20 {offsets = [0, 0], sizes = [2, 32], strides = [1, 1]} : vector<2x128xf32> to vector<2x32xf32>
    %cst_20 = arith.constant 5.000000e-01 : f32
    %22 = vector.broadcast %cst_20 : f32 to vector<2x32xf32>
    %23 = arith.mulf %22, %21 : vector<2x32xf32>
    %24 = math.tanh %23 : vector<2x32xf32>
    %cst_21 = arith.constant 1.000000e+00 : f32
    %25 = vector.broadcast %cst_21 : f32 to vector<2x32xf32>
    %26 = arith.addf %24, %25 : vector<2x32xf32>
    %cst_22 = arith.constant 5.000000e-01 : f32
    %27 = vector.broadcast %cst_22 : f32 to vector<2x32xf32>
    %28 = arith.mulf %27, %26 : vector<2x32xf32>
    %29 = vector.extract_strided_slice %20 {offsets = [0, 32], sizes = [2, 32], strides = [1, 1]} : vector<2x128xf32> to vector<2x32xf32>
    %cst_23 = arith.constant 5.000000e-01 : f32
    %30 = vector.broadcast %cst_23 : f32 to vector<2x32xf32>
    %31 = arith.mulf %30, %29 : vector<2x32xf32>
    %32 = math.tanh %31 : vector<2x32xf32>
    %cst_24 = arith.constant 1.000000e+00 : f32
    %33 = vector.broadcast %cst_24 : f32 to vector<2x32xf32>
    %34 = arith.addf %32, %33 : vector<2x32xf32>
    %cst_25 = arith.constant 5.000000e-01 : f32
    %35 = vector.broadcast %cst_25 : f32 to vector<2x32xf32>
    %36 = arith.mulf %35, %34 : vector<2x32xf32>
    %37 = vector.extract_strided_slice %20 {offsets = [0, 64], sizes = [2, 32], strides = [1, 1]} : vector<2x128xf32> to vector<2x32xf32>
    %38 = math.tanh %37 : vector<2x32xf32>
    %39 = vector.extract_strided_slice %20 {offsets = [0, 96], sizes = [2, 32], strides = [1, 1]} : vector<2x128xf32> to vector<2x32xf32>
    %cst_26 = arith.constant 5.000000e-01 : f32
    %40 = vector.broadcast %cst_26 : f32 to vector<2x32xf32>
    %41 = arith.mulf %40, %39 : vector<2x32xf32>
    %42 = math.tanh %41 : vector<2x32xf32>
    %cst_27 = arith.constant 1.000000e+00 : f32
    %43 = vector.broadcast %cst_27 : f32 to vector<2x32xf32>
    %44 = arith.addf %42, %43 : vector<2x32xf32>
    %cst_28 = arith.constant 5.000000e-01 : f32
    %45 = vector.broadcast %cst_28 : f32 to vector<2x32xf32>
    %46 = arith.mulf %45, %44 : vector<2x32xf32>
    %47 = arith.mulf %36, %13 : vector<2x32xf32>
    %48 = arith.mulf %28, %38 : vector<2x32xf32>
    %49 = arith.addf %47, %48 : vector<2x32xf32>
    %50 = math.tanh %49 : vector<2x32xf32>
    %51 = arith.mulf %46, %50 : vector<2x32xf32>
    %52 = arith.truncf %51 : vector<2x32xf32> to vector<2x32xbf16>
    %53 = arith.index_cast %c0_i32_14 : i32 to index
    %c0_29 = arith.constant 0 : index
    %c0_30 = arith.constant 0 : index
    %54 = vector.load %arg7[%53, %c0_29, %c0_30] : memref<8x2x32xbf16, #tpu.memory_space<vmem>>, vector<1x2x32xbf16>
    %55 = vector.shape_cast %54 : vector<1x2x32xbf16> to vector<2x32xbf16>
    %56 = vector.shape_cast %52 : vector<2x32xbf16> to vector<1x2x32xbf16>
    tpu.vector_store %arg7[%53, %c0_29, %c0_30], %56 {strides = array<i32>} : memref<8x2x32xbf16, #tpu.memory_space<vmem>>, vector<1x2x32xbf16>,
    %c1_i32 = arith.constant 1 : i32
    %57 = arith.index_cast %c1_i32 : i32 to index
    %c0_31 = arith.constant 0 : index
    %c0_32 = arith.constant 0 : index
    %58 = vector.load %arg10[%57, %c0_31, %c0_32] : memref<8x2x128xf32, #tpu.memory_space<vmem>>, vector<1x2x128xf32>
    %59 = vector.shape_cast %58 : vector<1x2x128xf32> to vector<2x128xf32>
    %60 = arith.truncf %51 : vector<2x32xf32> to vector<2x32xbf16>
    %c0_33 = arith.constant 0 : index
    %c0_34 = arith.constant 0 : index
    %61 = vector.load %arg3[%c0_33, %c0_34] : memref<32x128xbf16, #tpu.memory_space<vmem>>, vector<32x128xbf16>
    %cst_35 = arith.constant dense<0.000000e+00> : vector<2x128xf32>
    %62 = tpu.matmul %60, %61, %cst_35 {dimension_numbers = #tpu.dot_dimension_numbers<[1], [0], [0], [1], [0, 0, 1, 1], [], []>} : vector<2x32xbf16>, vector<32x128xbf16>, vector<2x128xf32> -> vector<2x128xf32>
    %63 = arith.addf %59, %62 : vector<2x128xf32>
    %64 = vector.extract_strided_slice %63 {offsets = [0, 0], sizes = [2, 32], strides = [1, 1]} : vector<2x128xf32> to vector<2x32xf32>
    %cst_36 = arith.constant 5.000000e-01 : f32
    %65 = vector.broadcast %cst_36 : f32 to vector<2x32xf32>
    %66 = arith.mulf %65, %64 : vector<2x32xf32>
    %67 = math.tanh %66 : vector<2x32xf32>
    %cst_37 = arith.constant 1.000000e+00 : f32
    %68 = vector.broadcast %cst_37 : f32 to vector<2x32xf32>
    %69 = arith.addf %67, %68 : vector<2x32xf32>
    %cst_38 = arith.constant 5.000000e-01 : f32
    %70 = vector.broadcast %cst_38 : f32 to vector<2x32xf32>
    %71 = arith.mulf %70, %69 : vector<2x32xf32>
    %72 = vector.extract_strided_slice %63 {offsets = [0, 32], sizes = [2, 32], strides = [1, 1]} : vector<2x128xf32> to vector<2x32xf32>
    %cst_39 = arith.constant 5.000000e-01 : f32
    %73 = vector.broadcast %cst_39 : f32 to vector<2x32xf32>
    %74 = arith.mulf %73, %72 : vector<2x32xf32>
    %75 = math.tanh %74 : vector<2x32xf32>
    %cst_40 = arith.constant 1.000000e+00 : f32
    %76 = vector.broadcast %cst_40 : f32 to vector<2x32xf32>
    %77 = arith.addf %75, %76 : vector<2x32xf32>
    %cst_41 = arith.constant 5.000000e-01 : f32
    %78 = vector.broadcast %cst_41 : f32 to vector<2x32xf32>
    %79 = arith.mulf %78, %77 : vector<2x32xf32>
    %80 = vector.extract_strided_slice %63 {offsets = [0, 64], sizes = [2, 32], strides = [1, 1]} : vector<2x128xf32> to vector<2x32xf32>
    %81 = math.tanh %80 : vector<2x32xf32>
    %82 = vector.extract_strided_slice %63 {offsets = [0, 96], sizes = [2, 32], strides = [1, 1]} : vector<2x128xf32> to vector<2x32xf32>
    %cst_42 = arith.constant 5.000000e-01 : f32
    %83 = vector.broadcast %cst_42 : f32 to vector<2x32xf32>
    %84 = arith.mulf %83, %82 : vector<2x32xf32>
    %85 = math.tanh %84 : vector<2x32xf32>
    %cst_43 = arith.constant 1.000000e+00 : f32
    %86 = vector.broadcast %cst_43 : f32 to vector<2x32xf32>
    %87 = arith.addf %85, %86 : vector<2x32xf32>
    %cst_44 = arith.constant 5.000000e-01 : f32
    %88 = vector.broadcast %cst_44 : f32 to vector<2x32xf32>
    %89 = arith.mulf %88, %87 : vector<2x32xf32>
    %90 = arith.mulf %79, %49 : vector<2x32xf32>
    %91 = arith.mulf %71, %81 : vector<2x32xf32>
    %92 = arith.addf %90, %91 : vector<2x32xf32>
    %93 = math.tanh %92 : vector<2x32xf32>
    %94 = arith.mulf %89, %93 : vector<2x32xf32>
    %95 = arith.truncf %94 : vector<2x32xf32> to vector<2x32xbf16>
    %96 = arith.index_cast %c1_i32 : i32 to index
    %c0_45 = arith.constant 0 : index
    %c0_46 = arith.constant 0 : index
    %97 = vector.load %arg7[%96, %c0_45, %c0_46] : memref<8x2x32xbf16, #tpu.memory_space<vmem>>, vector<1x2x32xbf16>
    %98 = vector.shape_cast %97 : vector<1x2x32xbf16> to vector<2x32xbf16>
    %99 = vector.shape_cast %95 : vector<2x32xbf16> to vector<1x2x32xbf16>
    tpu.vector_store %arg7[%96, %c0_45, %c0_46], %99 {strides = array<i32>} : memref<8x2x32xbf16, #tpu.memory_space<vmem>>, vector<1x2x32xbf16>,
    %c2_i32 = arith.constant 2 : i32
    %100 = arith.index_cast %c2_i32 : i32 to index
    %c0_47 = arith.constant 0 : index
    %c0_48 = arith.constant 0 : index
    %101 = vector.load %arg10[%100, %c0_47, %c0_48] : memref<8x2x128xf32, #tpu.memory_space<vmem>>, vector<1x2x128xf32>
    %102 = vector.shape_cast %101 : vector<1x2x128xf32> to vector<2x128xf32>
    %103 = arith.truncf %94 : vector<2x32xf32> to vector<2x32xbf16>
    %c0_49 = arith.constant 0 : index
    %c0_50 = arith.constant 0 : index
    %104 = vector.load %arg3[%c0_49, %c0_50] : memref<32x128xbf16, #tpu.memory_space<vmem>>, vector<32x128xbf16>
    %cst_51 = arith.constant dense<0.000000e+00> : vector<2x128xf32>
    %105 = tpu.matmul %103, %104, %cst_51 {dimension_numbers = #tpu.dot_dimension_numbers<[1], [0], [0], [1], [0, 0, 1, 1], [], []>} : vector<2x32xbf16>, vector<32x128xbf16>, vector<2x128xf32> -> vector<2x128xf32>
    %106 = arith.addf %102, %105 : vector<2x128xf32>
    %107 = vector.extract_strided_slice %106 {offsets = [0, 0], sizes = [2, 32], strides = [1, 1]} : vector<2x128xf32> to vector<2x32xf32>
    %cst_52 = arith.constant 5.000000e-01 : f32
    %108 = vector.broadcast %cst_52 : f32 to vector<2x32xf32>
    %109 = arith.mulf %108, %107 : vector<2x32xf32>
    %110 = math.tanh %109 : vector<2x32xf32>
    %cst_53 = arith.constant 1.000000e+00 : f32
    %111 = vector.broadcast %cst_53 : f32 to vector<2x32xf32>
    %112 = arith.addf %110, %111 : vector<2x32xf32>
    %cst_54 = arith.constant 5.000000e-01 : f32
    %113 = vector.broadcast %cst_54 : f32 to vector<2x32xf32>
    %114 = arith.mulf %113, %112 : vector<2x32xf32>
    %115 = vector.extract_strided_slice %106 {offsets = [0, 32], sizes = [2, 32], strides = [1, 1]} : vector<2x128xf32> to vector<2x32xf32>
    %cst_55 = arith.constant 5.000000e-01 : f32
    %116 = vector.broadcast %cst_55 : f32 to vector<2x32xf32>
    %117 = arith.mulf %116, %115 : vector<2x32xf32>
    %118 = math.tanh %117 : vector<2x32xf32>
    %cst_56 = arith.constant 1.000000e+00 : f32
    %119 = vector.broadcast %cst_56 : f32 to vector<2x32xf32>
    %120 = arith.addf %118, %119 : vector<2x32xf32>
    %cst_57 = arith.constant 5.000000e-01 : f32
    %121 = vector.broadcast %cst_57 : f32 to vector<2x32xf32>
    %122 = arith.mulf %121, %120 : vector<2x32xf32>
    %123 = vector.extract_strided_slice %106 {offsets = [0, 64], sizes = [2, 32], strides = [1, 1]} : vector<2x128xf32> to vector<2x32xf32>
    %124 = math.tanh %123 : vector<2x32xf32>
    %125 = vector.extract_strided_slice %106 {offsets = [0, 96], sizes = [2, 32], strides = [1, 1]} : vector<2x128xf32> to vector<2x32xf32>
    %cst_58 = arith.constant 5.000000e-01 : f32
    %126 = vector.broadcast %cst_58 : f32 to vector<2x32xf32>
    %127 = arith.mulf %126, %125 : vector<2x32xf32>
    %128 = math.tanh %127 : vector<2x32xf32>
    %cst_59 = arith.constant 1.000000e+00 : f32
    %129 = vector.broadcast %cst_59 : f32 to vector<2x32xf32>
    %130 = arith.addf %128, %129 : vector<2x32xf32>
    %cst_60 = arith.constant 5.000000e-01 : f32
    %131 = vector.broadcast %cst_60 : f32 to vector<2x32xf32>
    %132 = arith.mulf %131, %130 : vector<2x32xf32>
    %133 = arith.mulf %122, %92 : vector<2x32xf32>
    %134 = arith.mulf %114, %124 : vector<2x32xf32>
    %135 = arith.addf %133, %134 : vector<2x32xf32>
    %136 = math.tanh %135 : vector<2x32xf32>
    %137 = arith.mulf %132, %136 : vector<2x32xf32>
    %138 = arith.truncf %137 : vector<2x32xf32> to vector<2x32xbf16>
    %139 = arith.index_cast %c2_i32 : i32 to index
    %c0_61 = arith.constant 0 : index
    %c0_62 = arith.constant 0 : index
    %140 = vector.load %arg7[%139, %c0_61, %c0_62] : memref<8x2x32xbf16, #tpu.memory_space<vmem>>, vector<1x2x32xbf16>
    %141 = vector.shape_cast %140 : vector<1x2x32xbf16> to vector<2x32xbf16>
    %142 = vector.shape_cast %138 : vector<2x32xbf16> to vector<1x2x32xbf16>
    tpu.vector_store %arg7[%139, %c0_61, %c0_62], %142 {strides = array<i32>} : memref<8x2x32xbf16, #tpu.memory_space<vmem>>, vector<1x2x32xbf16>,
    %c3_i32 = arith.constant 3 : i32
    %143 = arith.index_cast %c3_i32 : i32 to index
    %c0_63 = arith.constant 0 : index
    %c0_64 = arith.constant 0 : index
    %144 = vector.load %arg10[%143, %c0_63, %c0_64] : memref<8x2x128xf32, #tpu.memory_space<vmem>>, vector<1x2x128xf32>
    %145 = vector.shape_cast %144 : vector<1x2x128xf32> to vector<2x128xf32>
    %146 = arith.truncf %137 : vector<2x32xf32> to vector<2x32xbf16>
    %c0_65 = arith.constant 0 : index
    %c0_66 = arith.constant 0 : index
    %147 = vector.load %arg3[%c0_65, %c0_66] : memref<32x128xbf16, #tpu.memory_space<vmem>>, vector<32x128xbf16>
    %cst_67 = arith.constant dense<0.000000e+00> : vector<2x128xf32>
    %148 = tpu.matmul %146, %147, %cst_67 {dimension_numbers = #tpu.dot_dimension_numbers<[1], [0], [0], [1], [0, 0, 1, 1], [], []>} : vector<2x32xbf16>, vector<32x128xbf16>, vector<2x128xf32> -> vector<2x128xf32>
    %149 = arith.addf %145, %148 : vector<2x128xf32>
    %150 = vector.extract_strided_slice %149 {offsets = [0, 0], sizes = [2, 32], strides = [1, 1]} : vector<2x128xf32> to vector<2x32xf32>
    %cst_68 = arith.constant 5.000000e-01 : f32
    %151 = vector.broadcast %cst_68 : f32 to vector<2x32xf32>
    %152 = arith.mulf %151, %150 : vector<2x32xf32>
    %153 = math.tanh %152 : vector<2x32xf32>
    %cst_69 = arith.constant 1.000000e+00 : f32
    %154 = vector.broadcast %cst_69 : f32 to vector<2x32xf32>
    %155 = arith.addf %153, %154 : vector<2x32xf32>
    %cst_70 = arith.constant 5.000000e-01 : f32
    %156 = vector.broadcast %cst_70 : f32 to vector<2x32xf32>
    %157 = arith.mulf %156, %155 : vector<2x32xf32>
    %158 = vector.extract_strided_slice %149 {offsets = [0, 32], sizes = [2, 32], strides = [1, 1]} : vector<2x128xf32> to vector<2x32xf32>
    %cst_71 = arith.constant 5.000000e-01 : f32
    %159 = vector.broadcast %cst_71 : f32 to vector<2x32xf32>
    %160 = arith.mulf %159, %158 : vector<2x32xf32>
    %161 = math.tanh %160 : vector<2x32xf32>
    %cst_72 = arith.constant 1.000000e+00 : f32
    %162 = vector.broadcast %cst_72 : f32 to vector<2x32xf32>
    %163 = arith.addf %161, %162 : vector<2x32xf32>
    %cst_73 = arith.constant 5.000000e-01 : f32
    %164 = vector.broadcast %cst_73 : f32 to vector<2x32xf32>
    %165 = arith.mulf %164, %163 : vector<2x32xf32>
    %166 = vector.extract_strided_slice %149 {offsets = [0, 64], sizes = [2, 32], strides = [1, 1]} : vector<2x128xf32> to vector<2x32xf32>
    %167 = math.tanh %166 : vector<2x32xf32>
    %168 = vector.extract_strided_slice %149 {offsets = [0, 96], sizes = [2, 32], strides = [1, 1]} : vector<2x128xf32> to vector<2x32xf32>
    %cst_74 = arith.constant 5.000000e-01 : f32
    %169 = vector.broadcast %cst_74 : f32 to vector<2x32xf32>
    %170 = arith.mulf %169, %168 : vector<2x32xf32>
    %171 = math.tanh %170 : vector<2x32xf32>
    %cst_75 = arith.constant 1.000000e+00 : f32
    %172 = vector.broadcast %cst_75 : f32 to vector<2x32xf32>
    %173 = arith.addf %171, %172 : vector<2x32xf32>
    %cst_76 = arith.constant 5.000000e-01 : f32
    %174 = vector.broadcast %cst_76 : f32 to vector<2x32xf32>
    %175 = arith.mulf %174, %173 : vector<2x32xf32>
    %176 = arith.mulf %165, %135 : vector<2x32xf32>
    %177 = arith.mulf %157, %167 : vector<2x32xf32>
    %178 = arith.addf %176, %177 : vector<2x32xf32>
    %179 = math.tanh %178 : vector<2x32xf32>
    %180 = arith.mulf %175, %179 : vector<2x32xf32>
    %181 = arith.truncf %180 : vector<2x32xf32> to vector<2x32xbf16>
    %182 = arith.index_cast %c3_i32 : i32 to index
    %c0_77 = arith.constant 0 : index
    %c0_78 = arith.constant 0 : index
    %183 = vector.load %arg7[%182, %c0_77, %c0_78] : memref<8x2x32xbf16, #tpu.memory_space<vmem>>, vector<1x2x32xbf16>
    %184 = vector.shape_cast %183 : vector<1x2x32xbf16> to vector<2x32xbf16>
    %185 = vector.shape_cast %181 : vector<2x32xbf16> to vector<1x2x32xbf16>
    tpu.vector_store %arg7[%182, %c0_77, %c0_78], %185 {strides = array<i32>} : memref<8x2x32xbf16, #tpu.memory_space<vmem>>, vector<1x2x32xbf16>,
    %c4_i32 = arith.constant 4 : i32
    %186 = arith.index_cast %c4_i32 : i32 to index
    %c0_79 = arith.constant 0 : index
    %c0_80 = arith.constant 0 : index
    %187 = vector.load %arg10[%186, %c0_79, %c0_80] : memref<8x2x128xf32, #tpu.memory_space<vmem>>, vector<1x2x128xf32>
    %188 = vector.shape_cast %187 : vector<1x2x128xf32> to vector<2x128xf32>
    %189 = arith.truncf %180 : vector<2x32xf32> to vector<2x32xbf16>
    %c0_81 = arith.constant 0 : index
    %c0_82 = arith.constant 0 : index
    %190 = vector.load %arg3[%c0_81, %c0_82] : memref<32x128xbf16, #tpu.memory_space<vmem>>, vector<32x128xbf16>
    %cst_83 = arith.constant dense<0.000000e+00> : vector<2x128xf32>
    %191 = tpu.matmul %189, %190, %cst_83 {dimension_numbers = #tpu.dot_dimension_numbers<[1], [0], [0], [1], [0, 0, 1, 1], [], []>} : vector<2x32xbf16>, vector<32x128xbf16>, vector<2x128xf32> -> vector<2x128xf32>
    %192 = arith.addf %188, %191 : vector<2x128xf32>
    %193 = vector.extract_strided_slice %192 {offsets = [0, 0], sizes = [2, 32], strides = [1, 1]} : vector<2x128xf32> to vector<2x32xf32>
    %cst_84 = arith.constant 5.000000e-01 : f32
    %194 = vector.broadcast %cst_84 : f32 to vector<2x32xf32>
    %195 = arith.mulf %194, %193 : vector<2x32xf32>
    %196 = math.tanh %195 : vector<2x32xf32>
    %cst_85 = arith.constant 1.000000e+00 : f32
    %197 = vector.broadcast %cst_85 : f32 to vector<2x32xf32>
    %198 = arith.addf %196, %197 : vector<2x32xf32>
    %cst_86 = arith.constant 5.000000e-01 : f32
    %199 = vector.broadcast %cst_86 : f32 to vector<2x32xf32>
    %200 = arith.mulf %199, %198 : vector<2x32xf32>
    %201 = vector.extract_strided_slice %192 {offsets = [0, 32], sizes = [2, 32], strides = [1, 1]} : vector<2x128xf32> to vector<2x32xf32>
    %cst_87 = arith.constant 5.000000e-01 : f32
    %202 = vector.broadcast %cst_87 : f32 to vector<2x32xf32>
    %203 = arith.mulf %202, %201 : vector<2x32xf32>
    %204 = math.tanh %203 : vector<2x32xf32>
    %cst_88 = arith.constant 1.000000e+00 : f32
    %205 = vector.broadcast %cst_88 : f32 to vector<2x32xf32>
    %206 = arith.addf %204, %205 : vector<2x32xf32>
    %cst_89 = arith.constant 5.000000e-01 : f32
    %207 = vector.broadcast %cst_89 : f32 to vector<2x32xf32>
    %208 = arith.mulf %207, %206 : vector<2x32xf32>
    %209 = vector.extract_strided_slice %192 {offsets = [0, 64], sizes = [2, 32], strides = [1, 1]} : vector<2x128xf32> to vector<2x32xf32>
    %210 = math.tanh %209 : vector<2x32xf32>
    %211 = vector.extract_strided_slice %192 {offsets = [0, 96], sizes = [2, 32], strides = [1, 1]} : vector<2x128xf32> to vector<2x32xf32>
    %cst_90 = arith.constant 5.000000e-01 : f32
    %212 = vector.broadcast %cst_90 : f32 to vector<2x32xf32>
    %213 = arith.mulf %212, %211 : vector<2x32xf32>
    %214 = math.tanh %213 : vector<2x32xf32>
    %cst_91 = arith.constant 1.000000e+00 : f32
    %215 = vector.broadcast %cst_91 : f32 to vector<2x32xf32>
    %216 = arith.addf %214, %215 : vector<2x32xf32>
    %cst_92 = arith.constant 5.000000e-01 : f32
    %217 = vector.broadcast %cst_92 : f32 to vector<2x32xf32>
    %218 = arith.mulf %217, %216 : vector<2x32xf32>
    %219 = arith.mulf %208, %178 : vector<2x32xf32>
    %220 = arith.mulf %200, %210 : vector<2x32xf32>
    %221 = arith.addf %219, %220 : vector<2x32xf32>
    %222 = math.tanh %221 : vector<2x32xf32>
    %223 = arith.mulf %218, %222 : vector<2x32xf32>
    %224 = arith.truncf %223 : vector<2x32xf32> to vector<2x32xbf16>
    %225 = arith.index_cast %c4_i32 : i32 to index
    %c0_93 = arith.constant 0 : index
    %c0_94 = arith.constant 0 : index
    %226 = vector.load %arg7[%225, %c0_93, %c0_94] : memref<8x2x32xbf16, #tpu.memory_space<vmem>>, vector<1x2x32xbf16>
    %227 = vector.shape_cast %226 : vector<1x2x32xbf16> to vector<2x32xbf16>
    %228 = vector.shape_cast %224 : vector<2x32xbf16> to vector<1x2x32xbf16>
    tpu.vector_store %arg7[%225, %c0_93, %c0_94], %228 {strides = array<i32>} : memref<8x2x32xbf16, #tpu.memory_space<vmem>>, vector<1x2x32xbf16>,
    %c5_i32 = arith.constant 5 : i32
    %229 = arith.index_cast %c5_i32 : i32 to index
    %c0_95 = arith.constant 0 : index
    %c0_96 = arith.constant 0 : index
    %230 = vector.load %arg10[%229, %c0_95, %c0_96] : memref<8x2x128xf32, #tpu.memory_space<vmem>>, vector<1x2x128xf32>
    %231 = vector.shape_cast %230 : vector<1x2x128xf32> to vector<2x128xf32>
    %232 = arith.truncf %223 : vector<2x32xf32> to vector<2x32xbf16>
    %c0_97 = arith.constant 0 : index
    %c0_98 = arith.constant 0 : index
    %233 = vector.load %arg3[%c0_97, %c0_98] : memref<32x128xbf16, #tpu.memory_space<vmem>>, vector<32x128xbf16>
    %cst_99 = arith.constant dense<0.000000e+00> : vector<2x128xf32>
    %234 = tpu.matmul %232, %233, %cst_99 {dimension_numbers = #tpu.dot_dimension_numbers<[1], [0], [0], [1], [0, 0, 1, 1], [], []>} : vector<2x32xbf16>, vector<32x128xbf16>, vector<2x128xf32> -> vector<2x128xf32>
    %235 = arith.addf %231, %234 : vector<2x128xf32>
    %236 = vector.extract_strided_slice %235 {offsets = [0, 0], sizes = [2, 32], strides = [1, 1]} : vector<2x128xf32> to vector<2x32xf32>
    %cst_100 = arith.constant 5.000000e-01 : f32
    %237 = vector.broadcast %cst_100 : f32 to vector<2x32xf32>
    %238 = arith.mulf %237, %236 : vector<2x32xf32>
    %239 = math.tanh %238 : vector<2x32xf32>
    %cst_101 = arith.constant 1.000000e+00 : f32
    %240 = vector.broadcast %cst_101 : f32 to vector<2x32xf32>
    %241 = arith.addf %239, %240 : vector<2x32xf32>
    %cst_102 = arith.constant 5.000000e-01 : f32
    %242 = vector.broadcast %cst_102 : f32 to vector<2x32xf32>
    %243 = arith.mulf %242, %241 : vector<2x32xf32>
    %244 = vector.extract_strided_slice %235 {offsets = [0, 32], sizes = [2, 32], strides = [1, 1]} : vector<2x128xf32> to vector<2x32xf32>
    %cst_103 = arith.constant 5.000000e-01 : f32
    %245 = vector.broadcast %cst_103 : f32 to vector<2x32xf32>
    %246 = arith.mulf %245, %244 : vector<2x32xf32>
    %247 = math.tanh %246 : vector<2x32xf32>
    %cst_104 = arith.constant 1.000000e+00 : f32
    %248 = vector.broadcast %cst_104 : f32 to vector<2x32xf32>
    %249 = arith.addf %247, %248 : vector<2x32xf32>
    %cst_105 = arith.constant 5.000000e-01 : f32
    %250 = vector.broadcast %cst_105 : f32 to vector<2x32xf32>
    %251 = arith.mulf %250, %249 : vector<2x32xf32>
    %252 = vector.extract_strided_slice %235 {offsets = [0, 64], sizes = [2, 32], strides = [1, 1]} : vector<2x128xf32> to vector<2x32xf32>
    %253 = math.tanh %252 : vector<2x32xf32>
    %254 = vector.extract_strided_slice %235 {offsets = [0, 96], sizes = [2, 32], strides = [1, 1]} : vector<2x128xf32> to vector<2x32xf32>
    %cst_106 = arith.constant 5.000000e-01 : f32
    %255 = vector.broadcast %cst_106 : f32 to vector<2x32xf32>
    %256 = arith.mulf %255, %254 : vector<2x32xf32>
    %257 = math.tanh %256 : vector<2x32xf32>
    %cst_107 = arith.constant 1.000000e+00 : f32
    %258 = vector.broadcast %cst_107 : f32 to vector<2x32xf32>
    %259 = arith.addf %257, %258 : vector<2x32xf32>
    %cst_108 = arith.constant 5.000000e-01 : f32
    %260 = vector.broadcast %cst_108 : f32 to vector<2x32xf32>
    %261 = arith.mulf %260, %259 : vector<2x32xf32>
    %262 = arith.mulf %251, %221 : vector<2x32xf32>
    %263 = arith.mulf %243, %253 : vector<2x32xf32>
    %264 = arith.addf %262, %263 : vector<2x32xf32>
    %265 = math.tanh %264 : vector<2x32xf32>
    %266 = arith.mulf %261, %265 : vector<2x32xf32>
    %267 = arith.truncf %266 : vector<2x32xf32> to vector<2x32xbf16>
    %268 = arith.index_cast %c5_i32 : i32 to index
    %c0_109 = arith.constant 0 : index
    %c0_110 = arith.constant 0 : index
    %269 = vector.load %arg7[%268, %c0_109, %c0_110] : memref<8x2x32xbf16, #tpu.memory_space<vmem>>, vector<1x2x32xbf16>
    %270 = vector.shape_cast %269 : vector<1x2x32xbf16> to vector<2x32xbf16>
    %271 = vector.shape_cast %267 : vector<2x32xbf16> to vector<1x2x32xbf16>
    tpu.vector_store %arg7[%268, %c0_109, %c0_110], %271 {strides = array<i32>} : memref<8x2x32xbf16, #tpu.memory_space<vmem>>, vector<1x2x32xbf16>,
    %c6_i32 = arith.constant 6 : i32
    %272 = arith.index_cast %c6_i32 : i32 to index
    %c0_111 = arith.constant 0 : index
    %c0_112 = arith.constant 0 : index
    %273 = vector.load %arg10[%272, %c0_111, %c0_112] : memref<8x2x128xf32, #tpu.memory_space<vmem>>, vector<1x2x128xf32>
    %274 = vector.shape_cast %273 : vector<1x2x128xf32> to vector<2x128xf32>
    %275 = arith.truncf %266 : vector<2x32xf32> to vector<2x32xbf16>
    %c0_113 = arith.constant 0 : index
    %c0_114 = arith.constant 0 : index
    %276 = vector.load %arg3[%c0_113, %c0_114] : memref<32x128xbf16, #tpu.memory_space<vmem>>, vector<32x128xbf16>
    %cst_115 = arith.constant dense<0.000000e+00> : vector<2x128xf32>
    %277 = tpu.matmul %275, %276, %cst_115 {dimension_numbers = #tpu.dot_dimension_numbers<[1], [0], [0], [1], [0, 0, 1, 1], [], []>} : vector<2x32xbf16>, vector<32x128xbf16>, vector<2x128xf32> -> vector<2x128xf32>
    %278 = arith.addf %274, %277 : vector<2x128xf32>
    %279 = vector.extract_strided_slice %278 {offsets = [0, 0], sizes = [2, 32], strides = [1, 1]} : vector<2x128xf32> to vector<2x32xf32>
    %cst_116 = arith.constant 5.000000e-01 : f32
    %280 = vector.broadcast %cst_116 : f32 to vector<2x32xf32>
    %281 = arith.mulf %280, %279 : vector<2x32xf32>
    %282 = math.tanh %281 : vector<2x32xf32>
    %cst_117 = arith.constant 1.000000e+00 : f32
    %283 = vector.broadcast %cst_117 : f32 to vector<2x32xf32>
    %284 = arith.addf %282, %283 : vector<2x32xf32>
    %cst_118 = arith.constant 5.000000e-01 : f32
    %285 = vector.broadcast %cst_118 : f32 to vector<2x32xf32>
    %286 = arith.mulf %285, %284 : vector<2x32xf32>
    %287 = vector.extract_strided_slice %278 {offsets = [0, 32], sizes = [2, 32], strides = [1, 1]} : vector<2x128xf32> to vector<2x32xf32>
    %cst_119 = arith.constant 5.000000e-01 : f32
    %288 = vector.broadcast %cst_119 : f32 to vector<2x32xf32>
    %289 = arith.mulf %288, %287 : vector<2x32xf32>
    %290 = math.tanh %289 : vector<2x32xf32>
    %cst_120 = arith.constant 1.000000e+00 : f32
    %291 = vector.broadcast %cst_120 : f32 to vector<2x32xf32>
    %292 = arith.addf %290, %291 : vector<2x32xf32>
    %cst_121 = arith.constant 5.000000e-01 : f32
    %293 = vector.broadcast %cst_121 : f32 to vector<2x32xf32>
    %294 = arith.mulf %293, %292 : vector<2x32xf32>
    %295 = vector.extract_strided_slice %278 {offsets = [0, 64], sizes = [2, 32], strides = [1, 1]} : vector<2x128xf32> to vector<2x32xf32>
    %296 = math.tanh %295 : vector<2x32xf32>
    %297 = vector.extract_strided_slice %278 {offsets = [0, 96], sizes = [2, 32], strides = [1, 1]} : vector<2x128xf32> to vector<2x32xf32>
    %cst_122 = arith.constant 5.000000e-01 : f32
    %298 = vector.broadcast %cst_122 : f32 to vector<2x32xf32>
    %299 = arith.mulf %298, %297 : vector<2x32xf32>
    %300 = math.tanh %299 : vector<2x32xf32>
    %cst_123 = arith.constant 1.000000e+00 : f32
    %301 = vector.broadcast %cst_123 : f32 to vector<2x32xf32>
    %302 = arith.addf %300, %301 : vector<2x32xf32>
    %cst_124 = arith.constant 5.000000e-01 : f32
    %303 = vector.broadcast %cst_124 : f32 to vector<2x32xf32>
    %304 = arith.mulf %303, %302 : vector<2x32xf32>
    %305 = arith.mulf %294, %264 : vector<2x32xf32>
    %306 = arith.mulf %286, %296 : vector<2x32xf32>
    %307 = arith.addf %305, %306 : vector<2x32xf32>
    %308 = math.tanh %307 : vector<2x32xf32>
    %309 = arith.mulf %304, %308 : vector<2x32xf32>
    %310 = arith.truncf %309 : vector<2x32xf32> to vector<2x32xbf16>
    %311 = arith.index_cast %c6_i32 : i32 to index
    %c0_125 = arith.constant 0 : index
    %c0_126 = arith.constant 0 : index
    %312 = vector.load %arg7[%311, %c0_125, %c0_126] : memref<8x2x32xbf16, #tpu.memory_space<vmem>>, vector<1x2x32xbf16>
    %313 = vector.shape_cast %312 : vector<1x2x32xbf16> to vector<2x32xbf16>
    %314 = vector.shape_cast %310 : vector<2x32xbf16> to vector<1x2x32xbf16>
    tpu.vector_store %arg7[%311, %c0_125, %c0_126], %314 {strides = array<i32>} : memref<8x2x32xbf16, #tpu.memory_space<vmem>>, vector<1x2x32xbf16>,
    %c7_i32 = arith.constant 7 : i32
    %315 = arith.index_cast %c7_i32 : i32 to index
    %c0_127 = arith.constant 0 : index
    %c0_128 = arith.constant 0 : index
    %316 = vector.load %arg10[%315, %c0_127, %c0_128] : memref<8x2x128xf32, #tpu.memory_space<vmem>>, vector<1x2x128xf32>
    %317 = vector.shape_cast %316 : vector<1x2x128xf32> to vector<2x128xf32>
    %318 = arith.truncf %309 : vector<2x32xf32> to vector<2x32xbf16>
    %c0_129 = arith.constant 0 : index
    %c0_130 = arith.constant 0 : index
    %319 = vector.load %arg3[%c0_129, %c0_130] : memref<32x128xbf16, #tpu.memory_space<vmem>>, vector<32x128xbf16>
    %cst_131 = arith.constant dense<0.000000e+00> : vector<2x128xf32>
    %320 = tpu.matmul %318, %319, %cst_131 {dimension_numbers = #tpu.dot_dimension_numbers<[1], [0], [0], [1], [0, 0, 1, 1], [], []>} : vector<2x32xbf16>, vector<32x128xbf16>, vector<2x128xf32> -> vector<2x128xf32>
    %321 = arith.addf %317, %320 : vector<2x128xf32>
    %322 = vector.extract_strided_slice %321 {offsets = [0, 0], sizes = [2, 32], strides = [1, 1]} : vector<2x128xf32> to vector<2x32xf32>
    %cst_132 = arith.constant 5.000000e-01 : f32
    %323 = vector.broadcast %cst_132 : f32 to vector<2x32xf32>
    %324 = arith.mulf %323, %322 : vector<2x32xf32>
    %325 = math.tanh %324 : vector<2x32xf32>
    %cst_133 = arith.constant 1.000000e+00 : f32
    %326 = vector.broadcast %cst_133 : f32 to vector<2x32xf32>
    %327 = arith.addf %325, %326 : vector<2x32xf32>
    %cst_134 = arith.constant 5.000000e-01 : f32
    %328 = vector.broadcast %cst_134 : f32 to vector<2x32xf32>
    %329 = arith.mulf %328, %327 : vector<2x32xf32>
    %330 = vector.extract_strided_slice %321 {offsets = [0, 32], sizes = [2, 32], strides = [1, 1]} : vector<2x128xf32> to vector<2x32xf32>
    %cst_135 = arith.constant 5.000000e-01 : f32
    %331 = vector.broadcast %cst_135 : f32 to vector<2x32xf32>
    %332 = arith.mulf %331, %330 : vector<2x32xf32>
    %333 = math.tanh %332 : vector<2x32xf32>
    %cst_136 = arith.constant 1.000000e+00 : f32
    %334 = vector.broadcast %cst_136 : f32 to vector<2x32xf32>
    %335 = arith.addf %333, %334 : vector<2x32xf32>
    %cst_137 = arith.constant 5.000000e-01 : f32
    %336 = vector.broadcast %cst_137 : f32 to vector<2x32xf32>
    %337 = arith.mulf %336, %335 : vector<2x32xf32>
    %338 = vector.extract_strided_slice %321 {offsets = [0, 64], sizes = [2, 32], strides = [1, 1]} : vector<2x128xf32> to vector<2x32xf32>
    %339 = math.tanh %338 : vector<2x32xf32>
    %340 = vector.extract_strided_slice %321 {offsets = [0, 96], sizes = [2, 32], strides = [1, 1]} : vector<2x128xf32> to vector<2x32xf32>
    %cst_138 = arith.constant 5.000000e-01 : f32
    %341 = vector.broadcast %cst_138 : f32 to vector<2x32xf32>
    %342 = arith.mulf %341, %340 : vector<2x32xf32>
    %343 = math.tanh %342 : vector<2x32xf32>
    %cst_139 = arith.constant 1.000000e+00 : f32
    %344 = vector.broadcast %cst_139 : f32 to vector<2x32xf32>
    %345 = arith.addf %343, %344 : vector<2x32xf32>
    %cst_140 = arith.constant 5.000000e-01 : f32
    %346 = vector.broadcast %cst_140 : f32 to vector<2x32xf32>
    %347 = arith.mulf %346, %345 : vector<2x32xf32>
    %348 = arith.mulf %337, %307 : vector<2x32xf32>
    %349 = arith.mulf %329, %339 : vector<2x32xf32>
    %350 = arith.addf %348, %349 : vector<2x32xf32>
    %351 = math.tanh %350 : vector<2x32xf32>
    %352 = arith.mulf %347, %351 : vector<2x32xf32>
    %353 = arith.truncf %352 : vector<2x32xf32> to vector<2x32xbf16>
    %354 = arith.index_cast %c7_i32 : i32 to index
    %c0_141 = arith.constant 0 : index
    %c0_142 = arith.constant 0 : index
    %355 = vector.load %arg7[%354, %c0_141, %c0_142] : memref<8x2x32xbf16, #tpu.memory_space<vmem>>, vector<1x2x32xbf16>
    %356 = vector.shape_cast %355 : vector<1x2x32xbf16> to vector<2x32xbf16>
    %357 = vector.shape_cast %353 : vector<2x32xbf16> to vector<1x2x32xbf16>
    tpu.vector_store %arg7[%354, %c0_141, %c0_142], %357 {strides = array<i32>} : memref<8x2x32xbf16, #tpu.memory_space<vmem>>, vector<1x2x32xbf16>,
    %c8_i32 = arith.constant 8 : i32
    %c0_143 = arith.constant 0 : index
    %c0_144 = arith.constant 0 : index
    %358 = vector.load %arg11[%c0_143, %c0_144] : memref<2x32xf32, #tpu.memory_space<vmem>>, vector<2x32xf32>
    tpu.vector_store %arg11[%c0_143, %c0_144], %352 {strides = array<i32>} : memref<2x32xf32, #tpu.memory_space<vmem>>, vector<2x32xf32>,
    %c0_145 = arith.constant 0 : index
    %c0_146 = arith.constant 0 : index
    %359 = vector.load %arg12[%c0_145, %c0_146] : memref<2x32xf32, #tpu.memory_space<vmem>>, vector<2x32xf32>
    tpu.vector_store %arg12[%c0_145, %c0_146], %350 {strides = array<i32>} : memref<2x32xf32, #tpu.memory_space<vmem>>, vector<2x32xf32>,
    %c0_i32_147 = arith.constant 0 : i32
    %360 = arith.cmpi eq, %arg0, %c0_i32_147 : i32
    %361 = arith.extui %360 : i1 to i32
    %c0_i32_148 = arith.constant 0 : i32
    %362 = arith.cmpi ne, %361, %c0_i32_148 : i32
    scf.if %362 {
      %c0_149 = arith.constant 0 : index
      %c0_150 = arith.constant 0 : index
      %363 = vector.load %arg11[%c0_149, %c0_150] : memref<2x32xf32, #tpu.memory_space<vmem>>, vector<2x32xf32>
      %c0_151 = arith.constant 0 : index
      %c0_152 = arith.constant 0 : index
      %364 = vector.load %arg8[%c0_151, %c0_152] : memref<2x32xf32, #tpu.memory_space<vmem>>, vector<2x32xf32>
      tpu.vector_store %arg8[%c0_151, %c0_152], %363 {strides = array<i32>} : memref<2x32xf32, #tpu.memory_space<vmem>>, vector<2x32xf32>,
      %c0_153 = arith.constant 0 : index
      %c0_154 = arith.constant 0 : index
      %365 = vector.load %arg12[%c0_153, %c0_154] : memref<2x32xf32, #tpu.memory_space<vmem>>, vector<2x32xf32>
      %c0_155 = arith.constant 0 : index
      %c0_156 = arith.constant 0 : index
      %366 = vector.load %arg9[%c0_155, %c0_156] : memref<2x32xf32, #tpu.memory_space<vmem>>, vector<2x32xf32>
      tpu.vector_store %arg9[%c0_155, %c0_156], %365 {strides = array<i32>} : memref<2x32xf32, #tpu.memory_space<vmem>>, vector<2x32xf32>,
    } else {
    }
    return
  }
  func.func @transform_0(%arg0: i32) -> (i32, i32, i32) {
    %c0_i32 = arith.constant 0 : i32
    %c0_i32_0 = arith.constant 0 : i32
    %c0_i32_1 = arith.constant 0 : i32
    return %arg0, %c0_i32, %c0_i32_0 : i32, i32, i32
  }
  func.func @transform_1(%arg0: i32) -> (i32, i32) {
    %c0_i32 = arith.constant 0 : i32
    %c0_i32_0 = arith.constant 0 : i32
    %c0_i32_1 = arith.constant 0 : i32
    return %c0_i32, %c0_i32_0 : i32, i32
  }
  func.func @transform_2(%arg0: i32) -> (i32, i32) {
    %c0_i32 = arith.constant 0 : i32
    %c0_i32_0 = arith.constant 0 : i32
    %c0_i32_1 = arith.constant 0 : i32
    return %c0_i32, %c0_i32_0 : i32, i32
  }
  func.func @transform_3(%arg0: i32) -> (i32, i32) {
    %c0_i32 = arith.constant 0 : i32
    %c0_i32_0 = arith.constant 0 : i32
    %c0_i32_1 = arith.constant 0 : i32
    return %c0_i32, %c0_i32_0 : i32, i32
  }
  func.func @transform_4(%arg0: i32) -> (i32, i32) {
    %c0_i32 = arith.constant 0 : i32
    %c0_i32_0 = arith.constant 0 : i32
    %c0_i32_1 = arith.constant 0 : i32
    return %c0_i32, %c0_i32_0 : i32, i32
  }
  func.func @transform_5(%arg0: i32) -> (i32, i32) {
    %c0_i32 = arith.constant 0 : i32
    %c0_i32_0 = arith.constant 0 : i32
    %c0_i32_1 = arith.constant 0 : i32
    return %c0_i32, %c0_i32_0 : i32, i32
  }
  func.func @transform_6(%arg0: i32) -> (i32, i32, i32) {
    %c0_i32 = arith.constant 0 : i32
    %c0_i32_0 = arith.constant 0 : i32
    %c0_i32_1 = arith.constant 0 : i32
    return %arg0, %c0_i32, %c0_i32_0 : i32, i32, i32
  }
  func.func @transform_7(%arg0: i32) -> (i32, i32) {
    %c0_i32 = arith.constant 0 : i32
    %c0_i32_0 = arith.constant 0 : i32
    %c0_i32_1 = arith.constant 0 : i32
    return %c0_i32, %c0_i32_0 : i32, i32
  }
  func.func @transform_8(%arg0: i32) -> (i32, i32) {
    %c0_i32 = arith.constant 0 : i32
    %c0_i32_0 = arith.constant 0 : i32
    %c0_i32_1 = arith.constant 0 : i32
    return %c0_i32, %c0_i32_0 : i32, i32
  }
}

</mosaic_0001>

<bundles_post_ra>
// kernel: tpu_custom_call.1
= control target key start
LH: loop header
LB: loop body
LE: loop exit
PB: predicated region body
PF: predicated region fallthrough
CT: control target
= control target key end

     0   :  { %14 = vsyncpa [#allocation6], 0  ;;  %s1383_s0 = inlined_call_operand.hbm [shape: bf16[8,2,32], index: 0, kind: input, shape index: {}]   ;;  %s1384_s1 = inlined_call_operand.hbm [shape: bf16[32,128], index: 1, kind: input, shape index: {}]   ;;  %s1385_s2 = inlined_call_operand.hbm [shape: bf16[32,128], index: 2, kind: input, shape index: {}]   ;;  %s1386_s3 = inlined_call_operand.hbm [shape: f32[1,128], index: 3, kind: input, shape index: {}]   ;;  %s1387_s4 = inlined_call_operand.vmem [shape: f32[2,32], index: 4, kind: input, shape index: {}]   ;;  %s1388_s5 = inlined_call_operand.vmem [shape: f32[2,32], index: 5, kind: input, shape index: {}]   ;;  %s1389_s6 = inlined_call_operand.hbm [shape: bf16[8,2,32], index: 6, kind: output, shape index: {0}]   ;;  %s1390_s7 = inlined_call_operand.hbm [shape: f32[2,32], index: 7, kind: output, shape index: {1}]   ;;  %s1391_s8 = inlined_call_operand.hbm [shape: f32[2,32], index: 8, kind: output, shape index: {2}]  }
   0x1   :  { %15 = vsyncpa [#allocation9], 0 }
   0x2   :  { %16 = vsyncpa [#allocation12], 0 }
   0x3   :  { %17 = vsyncpa [#allocation7], 0  ;;  %s36_s29 = sshll.u32 %s1384_s1, 4  ;;  %s37_s29 = int_to_ptr.hbm [resolvable:$true] %s36_s29 }
   0x4   :  { %18 = vsyncpa [#allocation15], 0  ;;  %s1186_s30 = smov [#allocation8]   ;;  %s23_s12 = sshll.u32 %s1383_s0, 4  ;;  %s24_s12 = int_to_ptr.hbm [resolvable:$true] %s23_s12 }
   0x5   :  { %s38_s9 = sshll.u32 %s1186_s30, 4  ;;  %s1187_s13 = smov 64   ;;  %s39_s9 = int_to_ptr.vmem [resolvable:$true] %s38_s9 }
   0x6   :  { %s1188_s14 = smov 4   ;;  %s1189_s15 = smov [#allocation5]  }
   0x7   :  { %44 = dma.hbm_to_vmem [thread:$0]  %s37_s29, 256, %s39_s9, [#allocation9], %s1187_s13, %s1187_s13, %s1188_s14  }
   0x8   :  { %s25_s16 = sshll.u32 %s1189_s15, 4  ;;  %s1190_s17 = smov 16   ;;  %s26_s16 = int_to_ptr.vmem [resolvable:$true] %s25_s16 }
   0x9   :  { %s1191_s1 = smov 1   ;;  %s49_s20 = sshll.u32 %s1385_s2, 4  ;;  %s50_s20 = int_to_ptr.hbm [resolvable:$true] %s49_s20 }
   0xa   :  { %31 = dma.hbm_to_vmem [thread:$0]  %s24_s12, 128, %s26_s16, [#allocation6], %s1190_s17, %s1190_s17, %s1191_s1  }
   0xb   :  { %s1192_s0 = smov [#allocation10]   ;;  %s63_s24 = sshll.u32 %s1386_s3, 4  ;;  %s64_s24 = int_to_ptr.hbm [resolvable:$true] %s63_s24 }
   0xc   :  { %s51_s21 = sshll.u32 %s1192_s0, 4  ;;  %s1193_s25 = smov [#allocation11]   ;;  %s52_s21 = int_to_ptr.vmem [resolvable:$true] %s51_s21 }
   0xd   :  { %57 = dma.hbm_to_vmem [thread:$0]  %s50_s20, 256, %s52_s21, [#allocation9], %s1187_s13, %s1187_s13, %s1188_s14  }
   0xe   :  { %s65_s26 = sshll.u32 %s1193_s25, 4  ;;  %s66_s26 = int_to_ptr.vmem [resolvable:$true] %s65_s26 }
   0xf   :  { %68 = dma.hbm_to_vmem [thread:$0]  %s64_s24, 16, %s66_s26, [#allocation12]  }
  0x10   :  { %1176 = dma.done.wait [#allocation6], 128  }
  0x11   :  { %1177 = vsyncadd [#allocation6], 4294967168 }
  0x12   :  { %1178 = dma.done.wait [#allocation9], 512  }
  0x13   :  { %1179 = vsyncadd [#allocation9], 4294966784 }
  0x14   :  { %1180 = dma.done.wait [#allocation12], 16  }
  0x15   :  { %1181 = vsyncadd [#allocation12], 4294967280  ;;  %v929_v0 = vld [vmem:[#allocation8 + $0x8] sm:$0xff]  ;;  %v931_v1 = vld [vmem:[#allocation10 + $0x8] sm:$0xff]  ;;  %vm95_vm0 = vcmask 254976   ;;  %vm151_vm1 = vcmask 261120  }
  0x16   :  { %v99_v2 = vld [vmem:[#allocation5] sm:$0x1]  ;;  %160 = vmatpush.bf16.msra.mxu0 %v929_v0  ;;  %219 = vmatpush.bf16.msra.mxu1 %v931_v1  ;;  %v928_v3 = vld [vmem:[#allocation8] sm:$0xff]  ;;  %v930_v4 = vld [vmem:[#allocation10] sm:$0xff]  ;;  %vm256_vm2 = vcmask 1040384   ;;  %vm264_vm3 = vcmask 253952  }
  0x17   :  { %v100_v5 = vld [vmem:[#allocation5 + $0x1] sm:$0x1]  ;;  %v101_v6 = vld [vmem:[#allocation5 + $0x2] sm:$0x1]  ;;  %v102_v7 = vld [vmem:[#allocation5 + $0x3] sm:$0x1] }
  0x18   :  { %116 = vst [vmem:[#allocation1] ss:$9 sm:$0xff] %v99_v2  ;;  %v103_v8 = vld [vmem:[#allocation5 + $0x4] sm:$0x1]  ;;  %v104_v9 = vld [vmem:[#allocation5 + $0x5] sm:$0x1] }
  0x19   :  { %119 = vst [vmem:[#allocation1 + $0x1] ss:$9 sm:$0xff] %v100_v5  ;;  %v105_v10 = vld [vmem:[#allocation5 + $0x6] sm:$0x1]  ;;  %v106_v11 = vld [vmem:[#allocation5 + $0x7] sm:$0x1] }
  0x1a   :  { %161 = vmatpush.bf16.msra.mxu0 %v928_v3  ;;  %220 = vmatpush.bf16.msra.mxu1 %v930_v4  ;;  %122 = vst [vmem:[#allocation1 + $0x2] ss:$9 sm:$0xff] %v101_v6  ;;  %v94_v12 = vld [vmem:[%s1387_s4] sm:$0x3]  ;;  %v959_v17 = vld [vmem:[#allocation11] ss:$0 sm:$0xff] }
  0x1b   :  { %125 = vst [vmem:[#allocation1 + $0x3] ss:$9 sm:$0xff] %v102_v7  ;;  %v97_v16 = vld [vmem:[%s1388_s5] sm:$0x3]  ;;  %s1194_s4 = smov 32   ;;  %v932_v46 = vld [vmem:[#allocation10] sm:$0xff] }
  0x1c   :  { %128 = vst [vmem:[#allocation1 + $0x4] ss:$9 sm:$0xff] %v103_v8  ;;  %v933_v45 = vld [vmem:[#allocation10 + $0x8] sm:$0xff]  ;;  %v934_v5 = vld [vmem:[#allocation10] sm:$0xff]  ;;  %s1195_s5 = smov 96   ;;  %s1196_s29 = smov [#allocation14]  }
  0x1d   :  { %131 = vst [vmem:[#allocation1 + $0x5] ss:$9 sm:$0xff] %v104_v9  ;;  %297 = vmatpush.bf16.msra.mxu2 %v933_v45  ;;  %v935_v4 = vld [vmem:[#allocation10 + $0x8] sm:$0xff]  ;;  %s813_s30 = sshll.u32 %s1196_s29, 4  ;;  %s815_s11 = sshll.u32 %s1390_s7, 4  ;;  %s814_s30 = int_to_ptr.vmem [resolvable:$true] %s813_s30  ;;  %s816_s11 = int_to_ptr.hbm [resolvable:$true] %s815_s11 }
  0x1e   :  { %134 = vst [vmem:[#allocation1 + $0x6] ss:$9 sm:$0xff] %v105_v10  ;;  %370 = vmatpush.bf16.msra.mxu3 %v935_v4  ;;  %s1197_s12 = smov [#allocation16]   ;;  %s826_s16 = sshll.u32 %s1391_s8, 4  ;;  %s827_s16 = int_to_ptr.hbm [resolvable:$true] %s826_s16 }
  0x1f   :  { %137 = vst [vmem:[#allocation1 + $0x7] ss:$9 sm:$0xff] %v106_v11  ;;  %s1198_s18 = smov [#allocation13]   ;;  %s801_s0 = sshll.u32 %s1389_s6, 4  ;;  %s802_s0 = int_to_ptr.hbm [resolvable:$true] %s801_s0 }
  0x20   :  { %96 = vst.msk [vmem:[#allocation3] sm:$0x3] %vm95_vm0, %v94_v12  ;;  %s799_s19 = sshll.u32 %s1198_s18, 4  ;;  %s800_s19 = int_to_ptr.vmem [resolvable:$true] %s799_s19 }
  0x21   :  { %98 = vst.msk [vmem:[#allocation4] sm:$0x3] %vm95_vm0, %v97_v16  ;;  %298 = vmatpush.bf16.msra.mxu2 %v932_v46 }
  0x22   :  { %371 = vmatpush.bf16.msra.mxu3 %v934_v5 }
  0x26   :  { %v138_v13 = vld [vmem:[#allocation1] sm:$0xff] }
  0x27   :  { %855 = vmatmul.msk.bf16.vlgmr.msra.gmra.mxu0 %vm151_vm1, %v138_v13  ;;  %v190_v14 = vld [vmem:[#allocation3] sm:$0x3] }
  0x28   :  { %v193_v15 = vpack.c.bf16 %v190_v14, %v190_v14  ;;  %v191_v33 = vld [vmem:[#allocation4] sm:$0x3] }
  0x2a   :  { %864 = vmatmul.msk.bf16.vlgmr.msra.gmra.mxu1 %vm151_vm1, %v193_v15 }
  0xa4   :  { %v163_v18 = vpop.f32.mrf.mxu0 }
  0xa5   :  { %v164_v19 = vadd.f32 %v959_v17, %v163_v18 }
  0xa7   :  { %v170_v20 = vrot.slane %v164_v19, 2  ;;  %v171_v21 = vrot.slane %v164_v19, 4  ;;  %v172_v22 = vrot.slane %v164_v19, 6  ;;  %182 = vst [vmem:[#allocation2] sm:$0x3] %v164_v19  ;;  %v222_v23 = vpop.f32.mrf.mxu1 }
  0xa9   :  { %183 = vst [vmem:[#allocation2 + $0x2] sm:$0x3] %v170_v20 }
  0xaa   :  { %184 = vst [vmem:[#allocation2 + $0x4] sm:$0x3] %v171_v21 }
  0xab   :  { %185 = vst [vmem:[#allocation2 + $0x6] sm:$0x3] %v172_v22 }
  0xac   :  { %v165_v24 = vpop.f32.mrf.mxu0 }
  0xad   :  { %v166_v25 = vadd.f32 %v959_v17, %v165_v24 }
  0xae   :  { %v192_v26 = vld [vmem:[#allocation2] sm:$0x3] }
  0xaf   :  { %v226_v27 = vadd.f32 %v222_v23, %v192_v26  ;;  %v173_v28 = vrot.slane %v166_v25, 2  ;;  %v174_v29 = vrot.slane %v166_v25, 4  ;;  %v175_v30 = vrot.slane %v166_v25, 6  ;;  %186 = vst [vmem:[#allocation2 + $0x8] sm:$0x3] %v166_v25  ;;  %v224_v31 = vpop.f32.mrf.mxu1 }
  0xb0   :  { %v267_v53 = vld [vmem:[#allocation2 + $0x2] sm:$0x3] }
  0xb1   :  { %187 = vst [vmem:[#allocation2 + $0xa] sm:$0x3] %v173_v28  ;;  %960 = vtanh.f32 %v226_v27  ;;  %v227_v34 = vmul.f32 0.5, %v226_v27  ;;  %v340_v12 = vld [vmem:[#allocation2 + $0x4] sm:$0x3]  ;;  %v937_v27 = vld [vmem:[#allocation10 + $0x8] sm:$0xff] }
  0xb2   :  { %188 = vst [vmem:[#allocation2 + $0xc] sm:$0x3] %v174_v29  ;;  %443 = vmatpush.bf16.msrb.mxu0 %v937_v27  ;;  %v936_v28 = vld [vmem:[#allocation10] sm:$0xff] }
  0xb3   :  { %189 = vst [vmem:[#allocation2 + $0xe] sm:$0x3] %v175_v30  ;;  %962 = vtanh.f32 %v227_v34 }
  0xb6   :  { %444 = vmatpush.bf16.msrb.mxu0 %v936_v28 }
  0xb7   :  { %v961_v32 = vpop.eup %960 }
  0xb8   :  { %238 = vrot.lane.b32.xlu0 %v961_v32, %s1187_s13 }
  0xb9   :  { %v963_v35 = vpop.eup %962 }
  0xba   :  { %v229_v36 = vadd.f32 1.0, %v963_v35  ;;  %v413_v35 = vld [vmem:[#allocation2 + $0x6] sm:$0x3] }
  0xbc   :  { %v230_v37 = vmul.f32 0.5, %v229_v36 }
  0xc0   :  { %233 = vrot.lane.b32.xlu0 %v191_v33, %s1194_s4 }
 0x12a   :  { %v239_v38 = vpop.permute.xlu0 %238 }
 0x12b   :  { %v241_v39 = vmul.f32 %v239_v38, %v230_v37 }
 0x12d   :  { %243 = vrot.lane.b32.xlu1 %v241_v39, %s1194_s4 }
 0x132   :  { %v234_v40 = vpop.permute.xlu0 %233 }
 0x133   :  { %v236_v41 = vmul.f32 %v234_v40, %v230_v37 }
 0x19f   :  { %v244_v42 = vpop.permute.xlu1 %243 }
 0x1a0   :  { %v246_v43 = vadd.f32 %v244_v42, %v236_v41 }
 0x1a2   :  { %964 = vtanh.f32 %v246_v43 }
 0x1a8   :  { %v965_v44 = vpop.eup %964 }
 0x1a9   :  { %249 = vrot.lane.b32.xlu1 %v965_v44, %s1187_s13 }
 0x21b   :  { %v250_v47 = vpop.permute.xlu1 %249 }
 0x21c   :  { %v252_v48 = vmul.f32 %v250_v47, %v230_v37 }
 0x21e   :  { %v1277_v49 = vpack.c.bf16 %v252_v48, %v252_v48 }
 0x220   :  { %v272_v50 = vunpack.c.l.b16 %v1277_v49 }
 0x222   :  { %v273_v51 = vpack.c.b16 %v272_v50, %v272_v50 }
 0x224   :  { %274 = vrot.lane.b32.xlu2 %v273_v51, %s1194_s4  ;;  %v939_v51 = vld [vmem:[#allocation10 + $0x8] sm:$0xff] }
 0x225   :  { %516 = vmatpush.bf16.msrb.mxu1 %v939_v51 }
 0x27e   :  { %v275_v52 = vpop.permute.xlu2 %274 }
 0x27f   :  { %873 = vmatmul.msk.bf16.vlgmr.msra.gmra.mxu2 %vm151_vm1, %v275_v52  ;;  %v938_v52 = vld [vmem:[#allocation10] sm:$0xff] }
 0x280   :  { %517 = vmatpush.bf16.msrb.mxu1 %v938_v52 }
 0x302   :  { %v300_v54 = vpop.f32.mrf.mxu2 }
 0x303   :  { %v304_v55 = vadd.f32 %v300_v54, %v267_v53 }
 0x305   :  { %966 = vtanh.f32 %v304_v55  ;;  %v305_v58 = vmul.f32 0.5, %v304_v55 }
 0x307   :  { %968 = vtanh.f32 %v305_v58 }
 0x30a   :  { %v302_v56 = vpop.f32.mrf.mxu2 }
 0x30b   :  { %v967_v57 = vpop.eup %966 }
 0x30c   :  { %312 = vrot.lane.b32.xlu2 %v967_v57, %s1187_s13 }
 0x30d   :  { %v969_v59 = vpop.eup %968 }
 0x30e   :  { %v307_v60 = vadd.f32 1.0, %v969_v59  ;;  %v486_v59 = vld [vmem:[#allocation2 + $0x8] sm:$0x3] }
 0x310   :  { %v308_v61 = vmul.f32 0.5, %v307_v60 }
 0x312   :  { %v310_v0 = vmul.f32 %v308_v61, %v246_v43 }
 0x366   :  { %v313_v62 = vpop.permute.xlu2 %312 }
 0x367   :  { %v315_v63 = vmul.f32 %v313_v62, %v308_v61 }
 0x369   :  { %317 = vrot.lane.b32.xlu0 %v315_v63, %s1194_s4 }
 0x3db   :  { %v318_v1 = vpop.permute.xlu0 %317 }
 0x3dc   :  { %v320_v2 = vadd.f32 %v318_v1, %v310_v0 }
 0x3de   :  { %970 = vtanh.f32 %v320_v2 }
 0x3e4   :  { %v971_v3 = vpop.eup %970 }
 0x3e5   :  { %323 = vrot.lane.b32.xlu1 %v971_v3, %s1187_s13 }
 0x457   :  { %v324_v6 = vpop.permute.xlu1 %323 }
 0x458   :  { %v326_v7 = vmul.f32 %v324_v6, %v308_v61 }
 0x45a   :  { %v1285_v8 = vpack.c.bf16 %v326_v7, %v326_v7 }
 0x45c   :  { %v345_v9 = vunpack.c.l.b16 %v1285_v8 }
 0x45e   :  { %v346_v10 = vpack.c.b16 %v345_v9, %v345_v9 }
 0x460   :  { %347 = vrot.lane.b32.xlu2 %v346_v10, %s1194_s4 }
 0x4ba   :  { %v348_v11 = vpop.permute.xlu2 %347 }
 0x4bb   :  { %882 = vmatmul.msk.bf16.vlgmr.msra.gmra.mxu3 %vm151_vm1, %v348_v11  ;;  %v941_v11 = vld [vmem:[#allocation10 + $0x8] sm:$0xff] }
 0x4bc   :  { %589 = vmatpush.bf16.msrb.mxu2 %v941_v11 }
 0x53e   :  { %v373_v13 = vpop.f32.mrf.mxu3 }
 0x53f   :  { %v377_v14 = vadd.f32 %v373_v13, %v340_v12  ;;  %v940_v12 = vld [vmem:[#allocation10] sm:$0xff] }
 0x540   :  { %590 = vmatpush.bf16.msrb.mxu2 %v940_v12 }
 0x541   :  { %972 = vtanh.f32 %v377_v14  ;;  %v378_v17 = vmul.f32 0.5, %v377_v14 }
 0x543   :  { %974 = vtanh.f32 %v378_v17 }
 0x546   :  { %v375_v15 = vpop.f32.mrf.mxu3 }
 0x547   :  { %v973_v16 = vpop.eup %972 }
 0x548   :  { %385 = vrot.lane.b32.xlu0 %v973_v16, %s1187_s13 }
 0x549   :  { %v975_v18 = vpop.eup %974 }
 0x54a   :  { %v380_v19 = vadd.f32 1.0, %v975_v18 }
 0x54c   :  { %v381_v20 = vmul.f32 0.5, %v380_v19  ;;  %v559_v19 = vld [vmem:[#allocation2 + $0xa] sm:$0x3] }
 0x54e   :  { %v383_v23 = vmul.f32 %v381_v20, %v320_v2 }
 0x5ba   :  { %v386_v21 = vpop.permute.xlu0 %385 }
 0x5bb   :  { %v388_v22 = vmul.f32 %v386_v21, %v381_v20 }
 0x5bd   :  { %390 = vrot.lane.b32.xlu1 %v388_v22, %s1194_s4 }
 0x62f   :  { %v391_v24 = vpop.permute.xlu1 %390 }
 0x630   :  { %v393_v25 = vadd.f32 %v391_v24, %v383_v23 }
 0x632   :  { %976 = vtanh.f32 %v393_v25 }
 0x638   :  { %v977_v26 = vpop.eup %976 }
 0x639   :  { %396 = vrot.lane.b32.xlu2 %v977_v26, %s1187_s13 }
 0x693   :  { %v397_v29 = vpop.permute.xlu2 %396 }
 0x694   :  { %v399_v30 = vmul.f32 %v397_v29, %v381_v20 }
 0x696   :  { %v1293_v31 = vpack.c.bf16 %v399_v30, %v399_v30 }
 0x698   :  { %v418_v32 = vunpack.c.l.b16 %v1293_v31 }
 0x69a   :  { %v419_v33 = vpack.c.b16 %v418_v32, %v418_v32 }
 0x69c   :  { %420 = vrot.lane.b32.xlu0 %v419_v33, %s1194_s4 }
 0x70e   :  { %v421_v34 = vpop.permute.xlu0 %420 }
 0x70f   :  { %891 = vmatmul.msk.bf16.vlgmr.msrb.gmra.mxu0 %vm151_vm1, %v421_v34 }
 0x78c   :  { %v446_v36 = vpop.f32.mrf.mxu0 }
 0x78d   :  { %v450_v37 = vadd.f32 %v446_v36, %v413_v35  ;;  %v943_v35 = vld [vmem:[#allocation10 + $0x8] sm:$0xff]  ;;  %v942_v36 = vld [vmem:[#allocation10] sm:$0xff] }
 0x78e   :  { %662 = vmatpush.bf16.msrb.mxu3 %v943_v35 }
 0x78f   :  { %978 = vtanh.f32 %v450_v37  ;;  %v451_v40 = vmul.f32 0.5, %v450_v37 }
 0x791   :  { %980 = vtanh.f32 %v451_v40 }
 0x792   :  { %663 = vmatpush.bf16.msrb.mxu3 %v942_v36 }
 0x794   :  { %v448_v38 = vpop.f32.mrf.mxu0 }
 0x795   :  { %v979_v39 = vpop.eup %978 }
 0x796   :  { %458 = vrot.lane.b32.xlu1 %v979_v39, %s1187_s13 }
 0x797   :  { %v981_v41 = vpop.eup %980 }
 0x798   :  { %v453_v42 = vadd.f32 1.0, %v981_v41 }
 0x79a   :  { %v454_v43 = vmul.f32 0.5, %v453_v42 }
 0x79c   :  { %v456_v46 = vmul.f32 %v454_v43, %v393_v25 }
 0x808   :  { %v459_v44 = vpop.permute.xlu1 %458 }
 0x809   :  { %v461_v45 = vmul.f32 %v459_v44, %v454_v43 }
 0x80b   :  { %463 = vrot.lane.b32.xlu2 %v461_v45, %s1194_s4 }
 0x865   :  { %v464_v47 = vpop.permute.xlu2 %463 }
 0x866   :  { %v466_v48 = vadd.f32 %v464_v47, %v456_v46 }
 0x868   :  { %982 = vtanh.f32 %v466_v48 }
 0x86e   :  { %v983_v50 = vpop.eup %982 }
 0x86f   :  { %469 = vrot.lane.b32.xlu0 %v983_v50, %s1187_s13 }
 0x8e1   :  { %v470_v53 = vpop.permute.xlu0 %469 }
 0x8e2   :  { %v472_v54 = vmul.f32 %v470_v53, %v454_v43  ;;  %v632_v43 = vld [vmem:[#allocation2 + $0xc] sm:$0x3] }
 0x8e4   :  { %v1301_v55 = vpack.c.bf16 %v472_v54, %v472_v54 }
 0x8e6   :  { %v491_v56 = vunpack.c.l.b16 %v1301_v55 }
 0x8e8   :  { %v492_v57 = vpack.c.b16 %v491_v56, %v491_v56 }
 0x8ea   :  { %493 = vrot.lane.b32.xlu1 %v492_v57, %s1194_s4 }
 0x95c   :  { %v494_v58 = vpop.permute.xlu1 %493 }
 0x95d   :  { %900 = vmatmul.msk.bf16.vlgmr.msrb.gmra.mxu1 %vm151_vm1, %v494_v58 }
 0x9da   :  { %v519_v60 = vpop.f32.mrf.mxu1 }
 0x9db   :  { %v523_v61 = vadd.f32 %v519_v60, %v486_v59  ;;  %v945_v60 = vld [vmem:[#allocation10 + $0x8] sm:$0xff] }
 0x9dc   :  { %735 = vmatpush.bf16.msra.mxu0 %v945_v60 }
 0x9dd   :  { %984 = vtanh.f32 %v523_v61  ;;  %v524_v0 = vmul.f32 0.5, %v523_v61  ;;  %v944_v61 = vld [vmem:[#allocation10] sm:$0xff] }
 0x9df   :  { %986 = vtanh.f32 %v524_v0 }
 0x9e0   :  { %736 = vmatpush.bf16.msra.mxu0 %v944_v61 }
 0x9e2   :  { %v521_v62 = vpop.f32.mrf.mxu1 }
 0x9e3   :  { %v985_v63 = vpop.eup %984 }
 0x9e4   :  { %531 = vrot.lane.b32.xlu2 %v985_v63, %s1187_s13 }
 0x9e5   :  { %v987_v1 = vpop.eup %986 }
 0x9e6   :  { %v526_v2 = vadd.f32 1.0, %v987_v1 }
 0x9e8   :  { %v527_v3 = vmul.f32 0.5, %v526_v2 }
 0x9ea   :  { %v529_v6 = vmul.f32 %v527_v3, %v466_v48 }
 0xa3e   :  { %v532_v4 = vpop.permute.xlu2 %531 }
 0xa3f   :  { %v534_v5 = vmul.f32 %v532_v4, %v527_v3  ;;  %v705_v4 = vld [vmem:[#allocation2 + $0xe] sm:$0x3] }
 0xa41   :  { %536 = vrot.lane.b32.xlu0 %v534_v5, %s1194_s4 }
 0xab3   :  { %v537_v7 = vpop.permute.xlu0 %536 }
 0xab4   :  { %v539_v9 = vadd.f32 %v537_v7, %v529_v6 }
 0xab6   :  { %988 = vtanh.f32 %v539_v9 }
 0xabc   :  { %v989_v10 = vpop.eup %988 }
 0xabd   :  { %542 = vrot.lane.b32.xlu1 %v989_v10, %s1187_s13  ;;  %v329_v10 = vrot.slane %v1285_v8, 3 }
 0xabf   :  { %v332_v11 = vsel %vm256_vm2, %v1285_v8, %v329_v10  ;;  %v402_v8 = vrot.slane %v1293_v31, 3 }
 0xb2f   :  { %v543_v13 = vpop.permute.xlu1 %542 }
 0xb30   :  { %v545_v14 = vmul.f32 %v543_v13, %v527_v3 }
 0xb32   :  { %v1309_v15 = vpack.c.bf16 %v545_v14, %v545_v14 }
 0xb34   :  { %v564_v16 = vunpack.c.l.b16 %v1309_v15 }
 0xb36   :  { %v565_v17 = vpack.c.b16 %v564_v16, %v564_v16 }
 0xb38   :  { %566 = vrot.lane.b32.xlu2 %v565_v17, %s1194_s4 }
 0xb92   :  { %v567_v18 = vpop.permute.xlu2 %566 }
 0xb93   :  { %909 = vmatmul.msk.bf16.vlgmr.msrb.gmra.mxu2 %vm151_vm1, %v567_v18 }
 0xc16   :  { %v592_v20 = vpop.f32.mrf.mxu2 }
 0xc17   :  { %v596_v21 = vadd.f32 %v592_v20, %v559_v19 }
 0xc19   :  { %990 = vtanh.f32 %v596_v21  ;;  %v597_v24 = vmul.f32 0.5, %v596_v21 }
 0xc1b   :  { %992 = vtanh.f32 %v597_v24  ;;  %v405_v24 = vsel %vm256_vm2, %v1293_v31, %v402_v8 }
 0xc1e   :  { %v594_v22 = vpop.f32.mrf.mxu2 }
 0xc1f   :  { %v991_v23 = vpop.eup %990 }
 0xc20   :  { %604 = vrot.lane.b32.xlu0 %v991_v23, %s1187_s13 }
 0xc21   :  { %v993_v25 = vpop.eup %992 }
 0xc22   :  { %v599_v26 = vadd.f32 1.0, %v993_v25  ;;  %v255_v25 = vrot.slane %v1277_v49, 3 }
 0xc24   :  { %v600_v27 = vmul.f32 0.5, %v599_v26 }
 0xc26   :  { %v602_v30 = vmul.f32 %v600_v27, %v539_v9 }
 0xc92   :  { %v605_v28 = vpop.permute.xlu0 %604 }
 0xc93   :  { %v607_v29 = vmul.f32 %v605_v28, %v600_v27 }
 0xc95   :  { %609 = vrot.lane.b32.xlu1 %v607_v29, %s1194_s4  ;;  %v475_v29 = vrot.slane %v1301_v55, 3 }
 0xc97   :  { %v478_v31 = vsel %vm256_vm2, %v1301_v55, %v475_v29  ;;  %v548_v55 = vrot.slane %v1309_v15, 3 }
 0xd07   :  { %v610_v32 = vpop.permute.xlu1 %609 }
 0xd08   :  { %v612_v33 = vadd.f32 %v610_v32, %v602_v30 }
 0xd0a   :  { %994 = vtanh.f32 %v612_v33 }
 0xd10   :  { %v995_v34 = vpop.eup %994 }
 0xd11   :  { %615 = vrot.lane.b32.xlu2 %v995_v34, %s1187_s13 }
 0xd6b   :  { %v616_v37 = vpop.permute.xlu2 %615 }
 0xd6c   :  { %v618_v38 = vmul.f32 %v616_v37, %v600_v27  ;;  %v259_v27 = vsel %vm256_vm2, %v1277_v49, %v255_v25 }
 0xd6e   :  { %v1317_v39 = vpack.c.bf16 %v618_v38, %v618_v38 }
 0xd70   :  { %v637_v40 = vunpack.c.l.b16 %v1317_v39  ;;  %v621_v26 = vrot.slane %v1317_v39, 3 }
 0xd72   :  { %v638_v41 = vpack.c.b16 %v637_v40, %v637_v40  ;;  %v624_v28 = vsel %vm256_vm2, %v1317_v39, %v621_v26  ;;  %v551_v40 = vsel %vm256_vm2, %v1309_v15, %v548_v55 }
 0xd74   :  { %639 = vrot.lane.b32.xlu0 %v638_v41, %s1194_s4 }
 0xde6   :  { %v640_v42 = vpop.permute.xlu0 %639 }
 0xde7   :  { %918 = vmatmul.msk.bf16.vlgmr.msrb.gmra.mxu3 %vm151_vm1, %v640_v42 }
 0xe6a   :  { %v665_v44 = vpop.f32.mrf.mxu3 }
 0xe6b   :  { %v669_v45 = vadd.f32 %v665_v44, %v632_v43 }
 0xe6d   :  { %996 = vtanh.f32 %v669_v45  ;;  %v670_v48 = vmul.f32 0.5, %v669_v45 }
 0xe6f   :  { %998 = vtanh.f32 %v670_v48 }
 0xe72   :  { %v667_v46 = vpop.f32.mrf.mxu3 }
 0xe73   :  { %v997_v47 = vpop.eup %996 }
 0xe74   :  { %677 = vrot.lane.b32.xlu1 %v997_v47, %s1187_s13 }
 0xe75   :  { %v999_v50 = vpop.eup %998 }
 0xe76   :  { %v672_v51 = vadd.f32 1.0, %v999_v50 }
 0xe78   :  { %v673_v52 = vmul.f32 0.5, %v672_v51 }
 0xe7a   :  { %v675_v56 = vmul.f32 %v673_v52, %v612_v33 }
 0xee6   :  { %v678_v53 = vpop.permute.xlu1 %677 }
 0xee7   :  { %v680_v54 = vmul.f32 %v678_v53, %v673_v52 }
 0xee9   :  { %682 = vrot.lane.b32.xlu2 %v680_v54, %s1194_s4 }
 0xf43   :  { %v683_v57 = vpop.permute.xlu2 %682 }
 0xf44   :  { %v685_v58 = vadd.f32 %v683_v57, %v675_v56 }
 0xf46   :  { %1000 = vtanh.f32 %v685_v58 }
 0xf4c   :  { %v1001_v59 = vpop.eup %1000 }
 0xf4d   :  { %688 = vrot.lane.b32.xlu0 %v1001_v59, %s1187_s13 }
 0xfbf   :  { %v689_v62 = vpop.permute.xlu0 %688 }
 0xfc0   :  { %v691_v63 = vmul.f32 %v689_v62, %v673_v52 }
 0xfc2   :  { %v692_v0 = vpack.c.bf16 %v691_v63, %v691_v63 }
 0xfc4   :  { %v710_v1 = vunpack.c.l.b16 %v692_v0  ;;  %v694_v30 = vrot.slane %v692_v0, 3 }
 0xfc6   :  { %v711_v2 = vpack.c.b16 %v710_v1, %v710_v1  ;;  %v697_v32 = vsel %vm256_vm2, %v692_v0, %v694_v30 }
 0xfc8   :  { %712 = vrot.lane.b32.xlu1 %v711_v2, %s1194_s4 }
0x103a   :  { %v713_v3 = vpop.permute.xlu1 %712 }
0x103b   :  { %927 = vmatmul.msk.bf16.vlgmr.msra.gmra.mxu0 %vm151_vm1, %v713_v3 }
0x10b8   :  { %v738_v5 = vpop.f32.mrf.mxu0 }
0x10b9   :  { %v742_v6 = vadd.f32 %v738_v5, %v705_v4 }
0x10bb   :  { %1002 = vtanh.f32 %v742_v6  ;;  %v743_v12 = vmul.f32 0.5, %v742_v6 }
0x10bd   :  { %1004 = vtanh.f32 %v743_v12 }
0x10c0   :  { %v740_v7 = vpop.f32.mrf.mxu0 }
0x10c1   :  { %v1003_v9 = vpop.eup %1002 }
0x10c2   :  { %750 = vrot.lane.b32.xlu2 %v1003_v9, %s1187_s13 }
0x10c3   :  { %v1005_v13 = vpop.eup %1004 }
0x10c4   :  { %v745_v14 = vadd.f32 1.0, %v1005_v13 }
0x10c6   :  { %v746_v16 = vmul.f32 0.5, %v745_v14 }
0x10c8   :  { %v748_v20 = vmul.f32 %v746_v16, %v685_v58 }
0x10ca   :  { %334 = vrot.lane.b32.xlu2 %v332_v11, %s1194_s4 }
0x111c   :  { %v751_v17 = vpop.permute.xlu2 %750 }
0x111d   :  { %v753_v18 = vmul.f32 %v751_v17, %v746_v16 }
0x111f   :  { %755 = vrot.lane.b32.xlu0 %v753_v18, %s1194_s4 }
0x1124   :  { %v335_v19 = vpop.permute.xlu2 %334 }
0x1125   :  { %338 = vst.msk [vmem:[#allocation13 + $0x1] sm:$0x1] %vm264_vm3, %v335_v19 }
0x1191   :  { %v756_v21 = vpop.permute.xlu0 %755 }
0x1192   :  { %v758_v22 = vadd.f32 %v756_v21, %v748_v20 }
0x1194   :  { %1006 = vtanh.f32 %v758_v22  ;;  %784 = vrot.lane.b32.xlu0 %v758_v22, %s1195_s5 }
0x119a   :  { %v1007_v23 = vpop.eup %1006 }
0x119b   :  { %761 = vrot.lane.b32.xlu1 %v1007_v23, %s1187_s13  ;;  %s824_s13 = sshll.u32 %s1197_s12, 4  ;;  %s825_s13 = int_to_ptr.vmem [resolvable:$true] %s824_s13 }
0x119c   :  { %407 = vrot.lane.b32.xlu0 %v405_v24, %s1194_s4 }
0x11a3   :  { %261 = vrot.lane.b32.xlu1 %v259_v27, %s1194_s4 }
0x11a4   :  { %626 = vrot.lane.b32.xlu0 %v624_v28, %s1194_s4 }
0x11ab   :  { %480 = vrot.lane.b32.xlu1 %v478_v31, %s1194_s4 }
0x11b3   :  { %699 = vrot.lane.b32.xlu1 %v697_v32, %s1194_s4 }
0x1206   :  { %v785_v49 = vpop.permute.xlu0 %784 }
0x1207   :  { %787 = vst.msk [vmem:[#allocation4] sm:$0x3] %vm95_vm0, %v785_v49 }
0x120d   :  { %v762_v33 = vpop.permute.xlu1 %761 }
0x120e   :  { %v764_v34 = vmul.f32 %v762_v33, %v746_v16  ;;  %v408_v35 = vpop.permute.xlu0 %407  ;;  %v793_v36 = vld [vmem:[#allocation4] sm:$0x3] }
0x120f   :  { %411 = vst.msk [vmem:[#allocation13 + $0x2] sm:$0x1] %vm264_vm3, %v408_v35 }
0x1210   :  { %778 = vrot.lane.b32.xlu2 %v764_v34, %s1194_s4  ;;  %794 = vst.msk [vmem:[#allocation16] sm:$0x3] %vm95_vm0, %v793_v36  ;;  %v765_v39 = vpack.c.bf16 %v764_v34, %v764_v34 }
0x1212   :  { %v767_v41 = vrot.slane %v765_v39, 3 }
0x1214   :  { %v770_v43 = vsel %vm256_vm2, %v765_v39, %v767_v41 }
0x1215   :  { %v262_v37 = vpop.permute.xlu1 %261 }
0x1216   :  { %265 = vst.msk [vmem:[#allocation13] sm:$0x1] %vm264_vm3, %v262_v37  ;;  %v627_v38 = vpop.permute.xlu0 %626 }
0x1217   :  { %630 = vst.msk [vmem:[#allocation13 + $0x5] sm:$0x1] %vm264_vm3, %v627_v38 }
0x1218   :  { %553 = vrot.lane.b32.xlu2 %v551_v40, %s1194_s4 }
0x121d   :  { %v481_v42 = vpop.permute.xlu1 %480 }
0x121e   :  { %484 = vst.msk [vmem:[#allocation13 + $0x3] sm:$0x1] %vm264_vm3, %v481_v42 }
0x1220   :  { %772 = vrot.lane.b32.xlu2 %v770_v43, %s1194_s4 }
0x1225   :  { %v700_v44 = vpop.permute.xlu1 %699 }
0x1226   :  { %703 = vst.msk [vmem:[#allocation13 + $0x6] sm:$0x1] %vm264_vm3, %v700_v44 }
0x126a   :  { %v779_v45 = vpop.permute.xlu2 %778 }
0x126b   :  { %782 = vst.msk [vmem:[#allocation3] sm:$0x3] %vm95_vm0, %v779_v45 }
0x1272   :  { %v554_v15 = vpop.permute.xlu2 %553  ;;  %v791_v46 = vld [vmem:[#allocation3] sm:$0x3] }
0x1273   :  { %557 = vst.msk [vmem:[#allocation13 + $0x4] sm:$0x1] %vm264_vm3, %v554_v15 }
0x1274   :  { %792 = vst.msk [vmem:[#allocation14] sm:$0x3] %vm95_vm0, %v791_v46 }
0x1275   :  { %818 = dma.vmem_to_hbm [thread:$0]  %s814_s30, 32, %s816_s11, [#allocation15]  }
0x1276   :  { %829 = dma.vmem_to_hbm [thread:$0]  %s825_s13, 32, %s827_s16, [#allocation15]  }
0x127a   :  { %v773_v47 = vpop.permute.xlu2 %772 }
0x127b   :  { %776 = vst.msk [vmem:[#allocation13 + $0x7] sm:$0x1] %vm264_vm3, %v773_v47 }
0x127c   :  { %807 = dma.vmem_to_hbm [thread:$0]  %s800_s19, 128, %s802_s0, [#allocation7], %s1190_s17, %s1190_s17, %s1191_s1  }
0x127d   :  { %1182 = dma.done.wait [#allocation7], 128  }
0x127e   :  { %1183 = vsyncadd [#allocation7], 4294967168 }
0x127f   :  { %1184 = dma.done.wait [#allocation15], 64  }
0x1280   :  { %1185 = vsyncadd [#allocation15], 4294967232 }
0x1281   :  { %842 = vsyncpa [#allocation6], 1 }
0x1282   :  { %843 = vsyncpa [#allocation9], 1 }
0x1283   :  { %844 = vsyncpa [#allocation12], 1 }
0x1284   :  { %845 = vsyncpa [#allocation7], 1 }
0x1285   :  { %846 = vsyncpa [#allocation15], 1 }

</bundles_post_ra>
